<compile_context>
chip_gen: v7x
topology: tpu7x:2x2x1
jax: 0.10.0
libtpu: 0.0.40
codegen_flags: <defaults>
</compile_context>

<pallas_src>
import jax
import jax.numpy as jnp
from jax.experimental import pallas as pl
from jax.experimental.pallas import tpu as pltpu

# ----------------------------------------------------------------------------
# Scaled-down but internally consistent Duet constants (same structural
# relations as the original 2000/30/18/100/99 configuration).
# ----------------------------------------------------------------------------
H = 32                      # NUM_HIDDEN_NODES (= word_embeddings_out_dim)
Q = 8                       # MAX_QUERY_TERMS
D = 16                      # MAX_DOC_TERMS
PK_Q = 6                    # POOLING_KERNEL_WIDTH_QUERY -> floor((Q-2)/PK_Q) == 1
PK_D = 4                    # POOLING_KERNEL_WIDTH_DOC (stride=1)
QC = Q - 2                  # query conv output length
DC = D - 2                  # doc conv output length
NPW = DC - PK_D + 1         # NUM_POOLING_WINDOWS_DOC
B = 2                       # batch
BB = B                      # batch elements per program (GRID = B // BB)
GRID = B // BB

assert (Q - 2) // PK_Q == 1, "query max-pool must produce exactly one window"
assert PK_Q <= QC and NPW >= 1
assert B % BB == 0
# If the grid is split (v7x dual-TC), keep the (BB, 128) out block legal.
assert GRID == 1 or BB % 8 == 0, "with GRID > 1, BB must be a multiple of 8"
# The in-kernel selection constants use shift/and tricks -> powers of two.
assert (H & (H - 1)) == 0 and (Q & (Q - 1)) == 0 and (D & (D - 1)) == 0

# ----------------------------------------------------------------------------
# Fused weight slab: all (H, n)-shaped right-multipliers packed contiguously
# (no per-segment padding; total = 1024 = 8*128 lanes). The (D, H) local-conv
# weight has a different row count and stays a separate tiny operand.
# ----------------------------------------------------------------------------
_SEGS = [
    ("loc_l1",  Q * H),     # Linear(H*Q -> H)   repacked as (H, Q*H)
    ("dist_l1", NPW * H),   # Linear(H*NPW -> H) repacked as (H, NPW*H)
    ("q_conv",  3 * H),     # Conv1d(H,H,k=3)    repacked as (H, 3H)
    ("d_conv",  3 * H),
    ("loc_l2",  H),
    ("q_lin",   H),
    ("d_conv2", H),
    ("dist_l2", H),
    ("c1",      H),
    ("c2",      H),
    ("c3",      H),         # Linear(H,1) padded to H cols, pre-scaled by 0.1
]
W_OFF = {}
_off = 0
for _name, _w in _SEGS:
    W_OFF[_name] = _off
    _off += _w
W_COLS = _off               # 1024

# bias stack row indices
BI_LOC_CONV, BI_LOC_L1, BI_LOC_L2 = 0, 1, 2
BI_Q_CONV, BI_Q_LIN = 3, 4
BI_D_CONV, BI_D_CONV2 = 5, 6
BI_DIST_L1, BI_DIST_L2 = 7, 8
BI_C1, BI_C2, BI_C3 = 9, 10, 11
NBIAS = 12


# ----------------------------------------------------------------------------
# Pallas kernel: full Duet forward for one block of BB batch elements,
# channels-last, batch sublane-stacked, weights bf16, accumulation f32.
# ----------------------------------------------------------------------------
def _duet_kernel(q_ref, d_ref, w_lc_ref, w_ref, b_ref, out_ref):
    f32, bf16 = jnp.float32, jnp.bfloat16
    relu = lambda v: jnp.maximum(v, 0.0)
    bdot = lambda a, w: jnp.dot(a.astype(bf16), w, preferred_element_type=f32)
    fdot = lambda a, b: jnp.dot(a, b, preferred_element_type=f32)
    bias = lambda i: b_ref[i:i + 1, :]                          # (1, H) f32
    wseg = lambda name, width: w_ref[:, W_OFF[name]:W_OFF[name] + width]
    iota = lambda shape, dim: jax.lax.broadcasted_iota(jnp.int32, shape, dim)
    sel = lambda c: c.astype(f32)                               # 0/1 matrix
    shl = lambda m: m.bit_length() - 1                          # log2 (pow2 only)

    BBQ, BBD = BB * Q, BB * D

    q_all = q_ref[...]                                          # (BB*Q, 2H) bf16
    d_all = d_ref[...]                                          # (BB*D, 2H) bf16
    q_cos = q_all[:, :H].astype(f32)                            # idf * l2norm(q)
    q_m = q_all[:, H:]                                          # masked q
    d_cos = d_all[:, :H].astype(f32)                            # l2norm(d)
    d_m = d_all[:, H:]                                          # masked d

    # --- cosine attention: batched over BB, no cross-batch waste -------------
    q3 = q_cos.reshape(BB, Q, H)
    d3 = d_cos.reshape(BB, D, H)
    cos3 = jax.lax.dot_general(q3, d3, (((2,), (2,)), ((0,), (0,))),
                               preferred_element_type=f32)      # (BB, Q, D)
    lw = cos3.reshape(BBQ, D)                                   # (BB*Q, D)

    # static 0/1 selection matrices (tiny; built once from 2-D iotas)
    g_loc = sel((iota((BB, BBQ), 1) >> shl(Q)) == iota((BB, BBQ), 0))   # group-sum q
    g_dst = sel((iota((BB, BBD), 1) >> shl(D)) == iota((BB, BBD), 0))   # group-sum d
    p_pick = sel(iota((BB, BBQ), 1) == iota((BB, BBQ), 0) * Q)          # pick row b*Q
    e_bcast = sel((iota((BBD, BB), 0) >> shl(D)) == iota((BBD, BB), 1)) # repeat x D
    rowq = iota((BBQ, 1), 0) & (Q - 1)                                  # t within group
    rowd = iota((BBD, 1), 0) & (D - 1)

    # --- local path -----------------------------------------------------------
    conv_loc = relu(bdot(lw, w_lc_ref[...]) + bias(BI_LOC_CONV))        # (BB*Q, H)
    # Flatten + Linear(H*Q -> H): one wide matmul, then a masked lane-slice
    # fold of the block-diagonal terms (op count independent of BB).
    r1 = bdot(conv_loc, wseg("loc_l1", Q * H))                          # (BB*Q, Q*H)
    fold1 = r1[:, 0:H] * sel(rowq == 0)
    for qq in range(1, Q):
        fold1 = fold1 + r1[:, qq * H:(qq + 1) * H] * sel(rowq == qq)
    h1 = relu(fdot(g_loc, fold1) + bias(BI_LOC_L1))                     # (BB, H)
    h_local = relu(bdot(h1, wseg("loc_l2", H)) + bias(BI_LOC_L2))       # (BB, H)

    # --- distributed query path: k=3 conv = one matmul + 2 sublane rolls -----
    rq = bdot(q_m, wseg("q_conv", 3 * H))                               # (BB*Q, 3H)
    cq = relu(bias(BI_Q_CONV)
              + rq[:, 0:H]
              + jnp.roll(rq, -1, axis=0)[:, H:2 * H]
              + jnp.roll(rq, -2, axis=0)[:, 2 * H:3 * H])               # (BB*Q, H)
    # MaxPool1d(PK_Q): window 0 only; rows of each group never cross batches.
    mq = cq
    for s in range(1, PK_Q):
        mq = jnp.maximum(mq, jnp.roll(cq, -s, axis=0))
    pq = fdot(p_pick, mq)                                               # (BB, H)
    h_dist_q = relu(bdot(pq, wseg("q_lin", H)) + bias(BI_Q_LIN))        # (BB, H)

    # --- distributed doc path -------------------------------------------------
    rd = bdot(d_m, wseg("d_conv", 3 * H))                               # (BB*D, 3H)
    cd = relu(bias(BI_D_CONV)
              + rd[:, 0:H]
              + jnp.roll(rd, -1, axis=0)[:, H:2 * H]
              + jnp.roll(rd, -2, axis=0)[:, 2 * H:3 * H])               # (BB*D, H)
    pm = cd                                                             # MaxPool1d(PK_D, stride=1)
    for s in range(1, PK_D):
        pm = jnp.maximum(pm, jnp.roll(cd, -s, axis=0))
    cd2 = relu(bdot(pm, wseg("d_conv2", H)) + bias(BI_D_CONV2))         # (BB*D, H)

    # h_dist_q broadcast to every doc row of its batch via a 0/1 matmul
    prod = cd2 * fdot(e_bcast, h_dist_q)                                # (BB*D, H)

    # Flatten + Linear(H*NPW -> H): same wide-matmul + masked fold pattern.
    r2 = bdot(prod, wseg("dist_l1", NPW * H))                           # (BB*D, NPW*H)
    fold2 = r2[:, 0:H] * sel(rowd == 0)
    for t in range(1, NPW):
        fold2 = fold2 + r2[:, t * H:(t + 1) * H] * sel(rowd == t)
    # rows with (row % D) >= NPW match no t -> contribute zero, as required
    hd = relu(fdot(g_dst, fold2) + bias(BI_DIST_L1))                    # (BB, H)
    h_dist = relu(bdot(hd, wseg("dist_l2", H)) + bias(BI_DIST_L2))      # (BB, H)

    # --- combination MLP (0.1 scale + c3 bias folded into packed c3; valid
    #     only because the scale is positive: relu(0.1*z) == 0.1*relu(z)) ----
    x = h_local + h_dist
    x1 = relu(bdot(x, wseg("c1", H)) + bias(BI_C1))
    x2 = relu(bdot(x1, wseg("c2", H)) + bias(BI_C2))
    y = relu(bdot(x2, wseg("c3", H)) + bias(BI_C3))                     # col 0 = 0.1*score

    # single lane-dense store: (BB, 4*H = 128) unmasked vst
    out_ref[...] = jnp.concatenate([y, x, h_local, h_dist], axis=1)


# ----------------------------------------------------------------------------
# Parameter init (PyTorch-native shapes) + glue packing into kernel layout.
# ----------------------------------------------------------------------------
def init_params(key):
    ks = jax.random.split(key, 24)
    u = lambda k, shape, lo=-0.05, hi=0.05: jax.random.uniform(k, shape, jnp.float32, lo, hi)
    p = {
        'loc_conv_w': u(ks[0], (H, D)),        # Conv1d(D, H, k=1).weight[:, :, 0]
        'loc_conv_b': u(ks[1], (H,)),
        'loc_l1_w':  u(ks[2], (H, H * Q)),     # Linear(H*Q, H)
        'loc_l1_b':  u(ks[3], (H,)),
        'loc_l2_w':  u(ks[4], (H, H)),
        'loc_l2_b':  u(ks[5], (H,)),
        'q_conv_w':  u(ks[6], (H, H, 3)),      # Conv1d(H, H, k=3)
        'q_conv_b':  u(ks[7], (H,)),
        'q_lin_w':   u(ks[8], (H, H)),
        'q_lin_b':   u(ks[9], (H,)),
        'd_conv_w':  u(ks[10], (H, H, 3)),
        'd_conv_b':  u(ks[11], (H,)),
        'd_conv2_w': u(ks[12], (H, H)),        # Conv1d(H, H, k=1).weight[:, :, 0]
        'd_conv2_b': u(ks[13], (H,)),
        'dist_l1_w': u(ks[14], (H, H * NPW)),  # Linear(H*NPW, H)
        'dist_l1_b': u(ks[15], (H,)),
        'dist_l2_w': u(ks[16], (H, H)),
        'dist_l2_b': u(ks[17], (H,)),
        # duet_comb: init_normal -> nn.init.uniform_(weight, 0, 0.01)
        'c1_w': u(ks[18], (H, H), 0.0, 0.01), 'c1_b': u(ks[19], (H,)),
        'c2_w': u(ks[20], (H, H), 0.0, 0.01), 'c2_b': u(ks[21], (H,)),
        'c3_w': u(ks[22], (1, H), 0.0, 0.01), 'c3_b': u(ks[23], (1,)),
    }
    return p


def pack_kernel_params(p):
    """Repack PyTorch-shaped weights into the kernel's fused channels-last layout.

    Flatten-linears: W_cat[h, t*H + g] = W_torch[g, h*T + t]  (T = Q or NPW),
    so that activation @ W_cat + block-diagonal fold reproduces PyTorch's
    Flatten over the channels-first (H, T) layout.
    k=3 convs:        W_cat[c, k*H + g] = W_torch[g, c, k].
    """
    segs = {
        'loc_l1':  p['loc_l1_w'].reshape(H, H, Q).transpose(1, 2, 0).reshape(H, Q * H),
        'dist_l1': p['dist_l1_w'].reshape(H, H, NPW).transpose(1, 2, 0).reshape(H, NPW * H),
        'q_conv':  p['q_conv_w'].transpose(1, 2, 0).reshape(H, 3 * H),
        'd_conv':  p['d_conv_w'].transpose(1, 2, 0).reshape(H, 3 * H),
        'loc_l2':  p['loc_l2_w'].T,
        'q_lin':   p['q_lin_w'].T,
        'd_conv2': p['d_conv2_w'].T,
        'dist_l2': p['dist_l2_w'].T,
        'c1':      p['c1_w'].T,
        'c2':      p['c2_w'].T,
        # fold the final *0.1 output scale into the last layer (scale > 0)
        'c3':      jnp.zeros((H, H), jnp.float32).at[:, 0].set(0.1 * p['c3_w'][0]),
    }
    w_big = jnp.concatenate([segs[name] for name, _ in _SEGS], axis=1)  # (H, 1024)

    b_c3 = jnp.zeros((H,), jnp.float32).at[0].set(0.1 * p['c3_b'][0])
    b_big = jnp.stack([
        p['loc_conv_b'], p['loc_l1_b'], p['loc_l2_b'],
        p['q_conv_b'], p['q_lin_b'],
        p['d_conv_b'], p['d_conv2_b'],
        p['dist_l1_b'], p['dist_l2_b'],
        p['c1_b'], p['c2_b'], b_c3], axis=0)                            # (NBIAS, H) f32

    w_loc_conv = p['loc_conv_w'].T.astype(jnp.bfloat16)                 # (D, H)
    return w_loc_conv, w_big.astype(jnp.bfloat16), b_big


# ----------------------------------------------------------------------------
# pallas_call wrapper.  Masking, L2-normalization and idf scaling are folded
# into the activations here (glue); activations are shipped in bf16.
# ----------------------------------------------------------------------------
@jax.jit
def duet_forward(q_emb, d_emb, q_mask, d_mask, q_idfs, w_loc_conv, w_big, b_big):
    q_m = q_emb * q_mask
    d_m = d_emb * d_mask
    qn = q_m / (jnp.sqrt(jnp.sum(q_m * q_m, -1, keepdims=True)) + 1e-13)
    dn = d_m / (jnp.sqrt(jnp.sum(d_m * d_m, -1, keepdims=True)) + 1e-13)
    q_in = jnp.concatenate([qn * q_idfs, q_m], axis=-1).reshape(B * Q, 2 * H).astype(jnp.bfloat16)
    d_in = jnp.concatenate([dn, d_m], axis=-1).reshape(B * D, 2 * H).astype(jnp.bfloat16)

    out = pl.pallas_call(
        _duet_kernel,
        out_shape=jax.ShapeDtypeStruct((GRID * BB, 4 * H), jnp.float32),
        grid=(GRID,),
        in_specs=[
            pl.BlockSpec((BB * Q, 2 * H), lambda i: (i, 0)),
            pl.BlockSpec((BB * D, 2 * H), lambda i: (i, 0)),
            pl.BlockSpec((D, H), lambda i: (0, 0)),
            pl.BlockSpec((H, W_COLS), lambda i: (0, 0)),
            pl.BlockSpec((NBIAS, H), lambda i: (0, 0)),
        ],
        out_specs=pl.BlockSpec((BB, 4 * H), lambda i: (i, 0)),
        compiler_params=pltpu.CompilerParams(dimension_semantics=("parallel",)),
    )(q_in, d_in, w_loc_conv, w_big, b_big)

    score = out[:, 0:1]                    # 0.1 * duet_comb output (pre-folded)
    x_comb = out[:, H:2 * H]
    h_local = out[:, 2 * H:3 * H]
    h_dist = out[:, 3 * H:4 * H]
    return score, x_comb, h_local, h_dist


# ----------------------------------------------------------------------------
# Pure-JAX reference with PyTorch (channels-first) semantics, for validation.
# ----------------------------------------------------------------------------
def duet_reference(q_emb, d_emb, q_mask, d_mask, q_idfs, p):
    relu = lambda v: jnp.maximum(v, 0.0)
    q = q_emb * q_mask
    d = d_emb * d_mask
    qn = q / (jnp.sqrt(jnp.sum(q * q, -1, keepdims=True)) + 1e-13)
    dn = d / (jnp.sqrt(jnp.sum(d * d, -1, keepdims=True)) + 1e-13)
    cos = jnp.einsum('bqh,bdh->bqd', qn, dn)
    lw = cos * q_idfs                                        # (B, Q, D)

    x = jnp.transpose(lw, (0, 2, 1))                         # (B, D, Q) channels-first
    c = relu(jnp.einsum('hd,bdq->bhq', p['loc_conv_w'], x) + p['loc_conv_b'][None, :, None])
    c = c.reshape(B, H * Q)                                  # PyTorch Flatten of (H, Q)
    h = relu(c @ p['loc_l1_w'].T + p['loc_l1_b'])
    h_local = relu(h @ p['loc_l2_w'].T + p['loc_l2_b'])

    xq = jnp.transpose(q, (0, 2, 1))                         # (B, H, Q)
    cq = sum(jnp.einsum('gc,bct->bgt', p['q_conv_w'][:, :, k], xq[:, :, k:k + QC]) for k in range(3))
    cq = relu(cq + p['q_conv_b'][None, :, None])
    pq = jnp.max(cq[:, :, :PK_Q], axis=2)
    h_dist_q = relu(pq @ p['q_lin_w'].T + p['q_lin_b'])

    xd = jnp.transpose(d, (0, 2, 1))                         # (B, H, D)
    cd = sum(jnp.einsum('gc,bct->bgt', p['d_conv_w'][:, :, k], xd[:, :, k:k + DC]) for k in range(3))
    cd = relu(cd + p['d_conv_b'][None, :, None])
    pd = cd[:, :, 0:NPW]
    for w in range(1, PK_D):
        pd = jnp.maximum(pd, cd[:, :, w:w + NPW])
    cd2 = relu(jnp.einsum('gc,bct->bgt', p['d_conv2_w'], pd) + p['d_conv2_b'][None, :, None])

    prod = h_dist_q[:, :, None] * cd2                        # (B, H, NPW)
    fd = prod.reshape(B, H * NPW)
    hd = relu(fd @ p['dist_l1_w'].T + p['dist_l1_b'])
    h_dist = relu(hd @ p['dist_l2_w'].T + p['dist_l2_b'])

    xx = h_local + h_dist
    xx = relu(xx @ p['c1_w'].T + p['c1_b'])
    xx = relu(xx @ p['c2_w'].T + p['c2_b'])
    y = relu(xx @ p['c3_w'].T + p['c3_b'])
    return y * 0.1, h_local, h_dist


# ----------------------------------------------------------------------------
if __name__ == "__main__":
    key = jax.random.PRNGKey(0)
    k_emb_q, k_emb_d, k_idf, k_param = jax.random.split(key, 4)

    q_emb = jax.random.normal(k_emb_q, (B, Q, H), jnp.float32)
    d_emb = jax.random.normal(k_emb_d, (B, D, H), jnp.float32)
    # padding masks (pre-unsqueezed to (..., 1), matching mask.unsqueeze(-1))
    q_mask = (jnp.arange(Q)[None, :] < jnp.array([Q, Q - 3])[:, None]).astype(jnp.float32)[:, :, None]
    d_mask = (jnp.arange(D)[None, :] < jnp.array([D, D - 5])[:, None]).astype(jnp.float32)[:, :, None]
    q_idfs = jax.random.uniform(k_idf, (B, Q, 1), jnp.float32, 0.5, 2.0)

    params = init_params(k_param)
    w_loc_conv, w_big, b_big = pack_kernel_params(params)

    score, x_comb, h_local, h_dist = duet_forward(
        q_emb, d_emb, q_mask, d_mask, q_idfs, w_loc_conv, w_big, b_big)
    score = jax.block_until_ready(score)

    ref_score, ref_h_local, ref_h_dist = duet_reference(
        q_emb, d_emb, q_mask, d_mask, q_idfs, params)

    assert score.shape == (B, 1)
    # Validate the pre-combination activations (stronger than the tiny final
    # score alone) and make sure they are non-trivial.  Tolerances are set for
    # bf16 activation / weight operands with f32 accumulation.
    assert float(jnp.max(jnp.abs(ref_h_local) + jnp.abs(ref_h_dist))) > 1e-3
    assert jnp.allclose(h_local, ref_h_local, atol=5e-3, rtol=3e-2), (h_local, ref_h_local)
    assert jnp.allclose(h_dist, ref_h_dist, atol=5e-3, rtol=3e-2), (h_dist, ref_h_dist)
    assert jnp.allclose(x_comb, ref_h_local + ref_h_dist, atol=5e-3, rtol=3e-2)
    assert jnp.allclose(score, ref_score, atol=1e-3, rtol=3e-2), (score, ref_score)

    print("KERNEL_OK")
</pallas_src>

<mosaic_0001>
module attributes {stable_mosaic.version = 11 : i64} {
  func.func @_duet_kernel(%arg0: i32, %arg1: memref<16x64xbf16, #tpu.memory_space<vmem>>, %arg2: memref<32x64xbf16, #tpu.memory_space<vmem>>, %arg3: memref<16x32xbf16, #tpu.memory_space<vmem>>, %arg4: memref<32x1024xbf16, #tpu.memory_space<vmem>>, %arg5: memref<12x32xf32, #tpu.memory_space<vmem>>, %arg6: memref<2x128xf32, #tpu.memory_space<vmem>>) attributes {dimension_semantics = [#tpu.dimension_semantics<parallel>], iteration_bounds = array<i64: 1>, scalar_prefetch = 0 : i64, scratch_operands = 0 : i64, tpu.core_type = #tpu.core_type<tc>, window_params = [{transform_indices = @transform_0, window_bounds = array<i64: 16, 64>}, {transform_indices = @transform_1, window_bounds = array<i64: 32, 64>}, {pipeline_mode = #tpu.pipeline_mode<synchronous>, transform_indices = @transform_2, window_bounds = array<i64: 16, 32>}, {pipeline_mode = #tpu.pipeline_mode<synchronous>, transform_indices = @transform_3, window_bounds = array<i64: 32, 1024>}, {pipeline_mode = #tpu.pipeline_mode<synchronous>, transform_indices = @transform_4, window_bounds = array<i64: 12, 32>}, {transform_indices = @transform_5, window_bounds = array<i64: 2, 128>}]} {
    %c0 = arith.constant 0 : index
    %c0_0 = arith.constant 0 : index
    %0 = vector.load %arg1[%c0, %c0_0] : memref<16x64xbf16, #tpu.memory_space<vmem>>, vector<16x64xbf16>
    %c0_1 = arith.constant 0 : index
    %c0_2 = arith.constant 0 : index
    %1 = vector.load %arg2[%c0_1, %c0_2] : memref<32x64xbf16, #tpu.memory_space<vmem>>, vector<32x64xbf16>
    %2 = vector.extract_strided_slice %0 {offsets = [0, 0], sizes = [16, 32], strides = [1, 1]} : vector<16x64xbf16> to vector<16x32xbf16>
    %3 = arith.extf %2 : vector<16x32xbf16> to vector<16x32xf32>
    %4 = vector.extract_strided_slice %0 {offsets = [0, 32], sizes = [16, 32], strides = [1, 1]} : vector<16x64xbf16> to vector<16x32xbf16>
    %5 = vector.extract_strided_slice %1 {offsets = [0, 0], sizes = [32, 32], strides = [1, 1]} : vector<32x64xbf16> to vector<32x32xbf16>
    %6 = arith.extf %5 : vector<32x32xbf16> to vector<32x32xf32>
    %7 = vector.extract_strided_slice %1 {offsets = [0, 32], sizes = [32, 32], strides = [1, 1]} : vector<32x64xbf16> to vector<32x32xbf16>
    %8 = vector.shape_cast %3 : vector<16x32xf32> to vector<2x8x32xf32>
    %9 = vector.shape_cast %6 : vector<32x32xf32> to vector<2x16x32xf32>
    %cst = arith.constant dense<0.000000e+00> : vector<2x8x16xf32>
    %10 = tpu.matmul %8, %9, %cst {dimension_numbers = #tpu.dot_dimension_numbers<[2], [2], [1], [1], [0, 0, 0, 1, 1, 1], [0], [0]>} : vector<2x8x32xf32>, vector<2x16x32xf32>, vector<2x8x16xf32> -> vector<2x8x16xf32>
    %11 = vector.shape_cast %10 : vector<2x8x16xf32> to vector<16x16xf32>
    %12 = tpu.iota {dimensions = array<i32: 1>} : vector<2x16xi32>
    %c3_i32 = arith.constant 3 : i32
    %13 = vector.broadcast %c3_i32 : i32 to vector<2x16xi32>
    %14 = arith.shrsi %12, %13 : vector<2x16xi32>
    %15 = tpu.iota {dimensions = array<i32: 0>} : vector<2x16xi32>
    %16 = arith.cmpi eq, %14, %15 : vector<2x16xi32>
    %17 = arith.extui %16 : vector<2x16xi1> to vector<2x16xi32>
    %18 = arith.sitofp %17 : vector<2x16xi32> to vector<2x16xf32>
    %19 = tpu.iota {dimensions = array<i32: 1>} : vector<2x32xi32>
    %c4_i32 = arith.constant 4 : i32
    %20 = vector.broadcast %c4_i32 : i32 to vector<2x32xi32>
    %21 = arith.shrsi %19, %20 : vector<2x32xi32>
    %22 = tpu.iota {dimensions = array<i32: 0>} : vector<2x32xi32>
    %23 = arith.cmpi eq, %21, %22 : vector<2x32xi32>
    %24 = arith.extui %23 : vector<2x32xi1> to vector<2x32xi32>
    %25 = arith.sitofp %24 : vector<2x32xi32> to vector<2x32xf32>
    %26 = tpu.iota {dimensions = array<i32: 1>} : vector<2x16xi32>
    %27 = tpu.iota {dimensions = array<i32: 0>} : vector<2x16xi32>
    %c8_i32 = arith.constant 8 : i32
    %28 = vector.broadcast %c8_i32 : i32 to vector<2x16xi32>
    %29 = arith.muli %27, %28 : vector<2x16xi32>
    %30 = arith.cmpi eq, %26, %29 : vector<2x16xi32>
    %31 = arith.extui %30 : vector<2x16xi1> to vector<2x16xi32>
    %32 = arith.sitofp %31 : vector<2x16xi32> to vector<2x16xf32>
    %33 = tpu.iota {dimensions = array<i32: 0>} : vector<32x2xi32>
    %c4_i32_3 = arith.constant 4 : i32
    %34 = vector.broadcast %c4_i32_3 : i32 to vector<32x2xi32>
    %35 = arith.shrsi %33, %34 : vector<32x2xi32>
    %36 = tpu.iota {dimensions = array<i32: 1>} : vector<32x2xi32>
    %37 = arith.cmpi eq, %35, %36 : vector<32x2xi32>
    %38 = arith.extui %37 : vector<32x2xi1> to vector<32x2xi32>
    %39 = arith.sitofp %38 : vector<32x2xi32> to vector<32x2xf32>
    %40 = tpu.iota {dimensions = array<i32: 0>} : vector<16x1xi32>
    %c7_i32 = arith.constant 7 : i32
    %41 = vector.broadcast %c7_i32 : i32 to vector<16x1xi32>
    %42 = arith.andi %40, %41 : vector<16x1xi32>
    %43 = tpu.iota {dimensions = array<i32: 0>} : vector<32x1xi32>
    %c15_i32 = arith.constant 15 : i32
    %44 = vector.broadcast %c15_i32 : i32 to vector<32x1xi32>
    %45 = arith.andi %43, %44 : vector<32x1xi32>
    %c0_4 = arith.constant 0 : index
    %c0_5 = arith.constant 0 : index
    %46 = vector.load %arg3[%c0_4, %c0_5] : memref<16x32xbf16, #tpu.memory_space<vmem>>, vector<16x32xbf16>
    %47 = arith.truncf %11 : vector<16x16xf32> to vector<16x16xbf16>
    %cst_6 = arith.constant dense<0.000000e+00> : vector<16x32xf32>
    %48 = tpu.matmul %47, %46, %cst_6 {dimension_numbers = #tpu.dot_dimension_numbers<[1], [0], [0], [1], [0, 0, 1, 1], [], []>} : vector<16x16xbf16>, vector<16x32xbf16>, vector<16x32xf32> -> vector<16x32xf32>
    %c0_7 = arith.constant 0 : index
    %c0_8 = arith.constant 0 : index
    %49 = vector.load %arg5[%c0_7, %c0_8] : memref<12x32xf32, #tpu.memory_space<vmem>>, vector<1x32xf32>
    %50 = vector.broadcast %49 : vector<1x32xf32> to vector<16x32xf32>
    %51 = arith.addf %48, %50 : vector<16x32xf32>
    %cst_9 = arith.constant 0.000000e+00 : f32
    %52 = vector.broadcast %cst_9 : f32 to vector<16x32xf32>
    %53 = arith.maximumf %51, %52 : vector<16x32xf32>
    %c0_10 = arith.constant 0 : index
    %c0_11 = arith.constant 0 : index
    %54 = vector.load %arg4[%c0_10, %c0_11] : memref<32x1024xbf16, #tpu.memory_space<vmem>>, vector<32x256xbf16>
    %55 = arith.truncf %53 : vector<16x32xf32> to vector<16x32xbf16>
    %cst_12 = arith.constant dense<0.000000e+00> : vector<16x256xf32>
    %56 = tpu.matmul %55, %54, %cst_12 {dimension_numbers = #tpu.dot_dimension_numbers<[1], [0], [0], [1], [0, 0, 1, 1], [], []>} : vector<16x32xbf16>, vector<32x256xbf16>, vector<16x256xf32> -> vector<16x256xf32>
    %57 = vector.extract_strided_slice %56 {offsets = [0, 0], sizes = [16, 32], strides = [1, 1]} : vector<16x256xf32> to vector<16x32xf32>
    %c0_i32 = arith.constant 0 : i32
    %58 = vector.broadcast %c0_i32 : i32 to vector<16x1xi32>
    %59 = arith.cmpi eq, %42, %58 : vector<16x1xi32>
    %60 = arith.extui %59 : vector<16x1xi1> to vector<16x1xi32>
    %61 = arith.sitofp %60 : vector<16x1xi32> to vector<16x1xf32>
    %62 = vector.broadcast %61 : vector<16x1xf32> to vector<16x32xf32>
    %63 = arith.mulf %57, %62 : vector<16x32xf32>
    %64 = vector.extract_strided_slice %56 {offsets = [0, 32], sizes = [16, 32], strides = [1, 1]} : vector<16x256xf32> to vector<16x32xf32>
    %c1_i32 = arith.constant 1 : i32
    %65 = vector.broadcast %c1_i32 : i32 to vector<16x1xi32>
    %66 = arith.cmpi eq, %42, %65 : vector<16x1xi32>
    %67 = arith.extui %66 : vector<16x1xi1> to vector<16x1xi32>
    %68 = arith.sitofp %67 : vector<16x1xi32> to vector<16x1xf32>
    %69 = vector.broadcast %68 : vector<16x1xf32> to vector<16x32xf32>
    %70 = arith.mulf %64, %69 : vector<16x32xf32>
    %71 = arith.addf %63, %70 : vector<16x32xf32>
    %72 = vector.extract_strided_slice %56 {offsets = [0, 64], sizes = [16, 32], strides = [1, 1]} : vector<16x256xf32> to vector<16x32xf32>
    %c2_i32 = arith.constant 2 : i32
    %73 = vector.broadcast %c2_i32 : i32 to vector<16x1xi32>
    %74 = arith.cmpi eq, %42, %73 : vector<16x1xi32>
    %75 = arith.extui %74 : vector<16x1xi1> to vector<16x1xi32>
    %76 = arith.sitofp %75 : vector<16x1xi32> to vector<16x1xf32>
    %77 = vector.broadcast %76 : vector<16x1xf32> to vector<16x32xf32>
    %78 = arith.mulf %72, %77 : vector<16x32xf32>
    %79 = arith.addf %71, %78 : vector<16x32xf32>
    %80 = vector.extract_strided_slice %56 {offsets = [0, 96], sizes = [16, 32], strides = [1, 1]} : vector<16x256xf32> to vector<16x32xf32>
    %c3_i32_13 = arith.constant 3 : i32
    %81 = vector.broadcast %c3_i32_13 : i32 to vector<16x1xi32>
    %82 = arith.cmpi eq, %42, %81 : vector<16x1xi32>
    %83 = arith.extui %82 : vector<16x1xi1> to vector<16x1xi32>
    %84 = arith.sitofp %83 : vector<16x1xi32> to vector<16x1xf32>
    %85 = vector.broadcast %84 : vector<16x1xf32> to vector<16x32xf32>
    %86 = arith.mulf %80, %85 : vector<16x32xf32>
    %87 = arith.addf %79, %86 : vector<16x32xf32>
    %88 = vector.extract_strided_slice %56 {offsets = [0, 128], sizes = [16, 32], strides = [1, 1]} : vector<16x256xf32> to vector<16x32xf32>
    %c4_i32_14 = arith.constant 4 : i32
    %89 = vector.broadcast %c4_i32_14 : i32 to vector<16x1xi32>
    %90 = arith.cmpi eq, %42, %89 : vector<16x1xi32>
    %91 = arith.extui %90 : vector<16x1xi1> to vector<16x1xi32>
    %92 = arith.sitofp %91 : vector<16x1xi32> to vector<16x1xf32>
    %93 = vector.broadcast %92 : vector<16x1xf32> to vector<16x32xf32>
    %94 = arith.mulf %88, %93 : vector<16x32xf32>
    %95 = arith.addf %87, %94 : vector<16x32xf32>
    %96 = vector.extract_strided_slice %56 {offsets = [0, 160], sizes = [16, 32], strides = [1, 1]} : vector<16x256xf32> to vector<16x32xf32>
    %c5_i32 = arith.constant 5 : i32
    %97 = vector.broadcast %c5_i32 : i32 to vector<16x1xi32>
    %98 = arith.cmpi eq, %42, %97 : vector<16x1xi32>
    %99 = arith.extui %98 : vector<16x1xi1> to vector<16x1xi32>
    %100 = arith.sitofp %99 : vector<16x1xi32> to vector<16x1xf32>
    %101 = vector.broadcast %100 : vector<16x1xf32> to vector<16x32xf32>
    %102 = arith.mulf %96, %101 : vector<16x32xf32>
    %103 = arith.addf %95, %102 : vector<16x32xf32>
    %104 = vector.extract_strided_slice %56 {offsets = [0, 192], sizes = [16, 32], strides = [1, 1]} : vector<16x256xf32> to vector<16x32xf32>
    %c6_i32 = arith.constant 6 : i32
    %105 = vector.broadcast %c6_i32 : i32 to vector<16x1xi32>
    %106 = arith.cmpi eq, %42, %105 : vector<16x1xi32>
    %107 = arith.extui %106 : vector<16x1xi1> to vector<16x1xi32>
    %108 = arith.sitofp %107 : vector<16x1xi32> to vector<16x1xf32>
    %109 = vector.broadcast %108 : vector<16x1xf32> to vector<16x32xf32>
    %110 = arith.mulf %104, %109 : vector<16x32xf32>
    %111 = arith.addf %103, %110 : vector<16x32xf32>
    %112 = vector.extract_strided_slice %56 {offsets = [0, 224], sizes = [16, 32], strides = [1, 1]} : vector<16x256xf32> to vector<16x32xf32>
    %c7_i32_15 = arith.constant 7 : i32
    %113 = vector.broadcast %c7_i32_15 : i32 to vector<16x1xi32>
    %114 = arith.cmpi eq, %42, %113 : vector<16x1xi32>
    %115 = arith.extui %114 : vector<16x1xi1> to vector<16x1xi32>
    %116 = arith.sitofp %115 : vector<16x1xi32> to vector<16x1xf32>
    %117 = vector.broadcast %116 : vector<16x1xf32> to vector<16x32xf32>
    %118 = arith.mulf %112, %117 : vector<16x32xf32>
    %119 = arith.addf %111, %118 : vector<16x32xf32>
    %cst_16 = arith.constant dense<0.000000e+00> : vector<2x32xf32>
    %120 = tpu.matmul %18, %119, %cst_16 {dimension_numbers = #tpu.dot_dimension_numbers<[1], [0], [0], [1], [0, 0, 1, 1], [], []>} : vector<2x16xf32>, vector<16x32xf32>, vector<2x32xf32> -> vector<2x32xf32>
    %c1 = arith.constant 1 : index
    %c0_17 = arith.constant 0 : index
    %121 = vector.load %arg5[%c1, %c0_17] : memref<12x32xf32, #tpu.memory_space<vmem>>, vector<1x32xf32>
    %122 = vector.broadcast %121 : vector<1x32xf32> to vector<2x32xf32>
    %123 = arith.addf %120, %122 : vector<2x32xf32>
    %cst_18 = arith.constant 0.000000e+00 : f32
    %124 = vector.broadcast %cst_18 : f32 to vector<2x32xf32>
    %125 = arith.maximumf %123, %124 : vector<2x32xf32>
    %c0_19 = arith.constant 0 : index
    %c800 = arith.constant 800 : index
    %126 = vector.load %arg4[%c0_19, %c800] : memref<32x1024xbf16, #tpu.memory_space<vmem>>, vector<32x32xbf16>
    %127 = arith.truncf %125 : vector<2x32xf32> to vector<2x32xbf16>
    %cst_20 = arith.constant dense<0.000000e+00> : vector<2x32xf32>
    %128 = tpu.matmul %127, %126, %cst_20 {dimension_numbers = #tpu.dot_dimension_numbers<[1], [0], [0], [1], [0, 0, 1, 1], [], []>} : vector<2x32xbf16>, vector<32x32xbf16>, vector<2x32xf32> -> vector<2x32xf32>
    %c2 = arith.constant 2 : index
    %c0_21 = arith.constant 0 : index
    %129 = vector.load %arg5[%c2, %c0_21] : memref<12x32xf32, #tpu.memory_space<vmem>>, vector<1x32xf32>
    %130 = vector.broadcast %129 : vector<1x32xf32> to vector<2x32xf32>
    %131 = arith.addf %128, %130 : vector<2x32xf32>
    %cst_22 = arith.constant 0.000000e+00 : f32
    %132 = vector.broadcast %cst_22 : f32 to vector<2x32xf32>
    %133 = arith.maximumf %131, %132 : vector<2x32xf32>
    %c0_23 = arith.constant 0 : index
    %c608 = arith.constant 608 : index
    %134 = vector.load %arg4[%c0_23, %c608] : memref<32x1024xbf16, #tpu.memory_space<vmem>>, vector<32x96xbf16>
    %cst_24 = arith.constant dense<0.000000e+00> : vector<16x96xf32>
    %135 = tpu.matmul %4, %134, %cst_24 {dimension_numbers = #tpu.dot_dimension_numbers<[1], [0], [0], [1], [0, 0, 1, 1], [], []>} : vector<16x32xbf16>, vector<32x96xbf16>, vector<16x96xf32> -> vector<16x96xf32>
    %c3 = arith.constant 3 : index
    %c0_25 = arith.constant 0 : index
    %136 = vector.load %arg5[%c3, %c0_25] : memref<12x32xf32, #tpu.memory_space<vmem>>, vector<1x32xf32>
    %137 = vector.extract_strided_slice %135 {offsets = [0, 0], sizes = [16, 32], strides = [1, 1]} : vector<16x96xf32> to vector<16x32xf32>
    %138 = vector.broadcast %136 : vector<1x32xf32> to vector<16x32xf32>
    %139 = arith.addf %138, %137 : vector<16x32xf32>
    %140 = vector.extract_strided_slice %135 {offsets = [1, 0], sizes = [15, 96], strides = [1, 1]} : vector<16x96xf32> to vector<15x96xf32>
    %141 = vector.extract_strided_slice %135 {offsets = [0, 0], sizes = [1, 96], strides = [1, 1]} : vector<16x96xf32> to vector<1x96xf32>
    %142 = tpu.concatenate %140, %141 in 0 : vector<15x96xf32>, vector<1x96xf32> -> vector<16x96xf32>
    %143 = vector.extract_strided_slice %142 {offsets = [0, 32], sizes = [16, 32], strides = [1, 1]} : vector<16x96xf32> to vector<16x32xf32>
    %144 = arith.addf %139, %143 : vector<16x32xf32>
    %145 = vector.extract_strided_slice %135 {offsets = [2, 0], sizes = [14, 96], strides = [1, 1]} : vector<16x96xf32> to vector<14x96xf32>
    %146 = vector.extract_strided_slice %135 {offsets = [0, 0], sizes = [2, 96], strides = [1, 1]} : vector<16x96xf32> to vector<2x96xf32>
    %147 = tpu.concatenate %145, %146 in 0 : vector<14x96xf32>, vector<2x96xf32> -> vector<16x96xf32>
    %148 = vector.extract_strided_slice %147 {offsets = [0, 64], sizes = [16, 32], strides = [1, 1]} : vector<16x96xf32> to vector<16x32xf32>
    %149 = arith.addf %144, %148 : vector<16x32xf32>
    %cst_26 = arith.constant 0.000000e+00 : f32
    %150 = vector.broadcast %cst_26 : f32 to vector<16x32xf32>
    %151 = arith.maximumf %149, %150 : vector<16x32xf32>
    %152 = vector.extract_strided_slice %151 {offsets = [1, 0], sizes = [15, 32], strides = [1, 1]} : vector<16x32xf32> to vector<15x32xf32>
    %153 = vector.extract_strided_slice %151 {offsets = [0, 0], sizes = [1, 32], strides = [1, 1]} : vector<16x32xf32> to vector<1x32xf32>
    %154 = tpu.concatenate %152, %153 in 0 : vector<15x32xf32>, vector<1x32xf32> -> vector<16x32xf32>
    %155 = arith.maximumf %151, %154 : vector<16x32xf32>
    %156 = vector.extract_strided_slice %151 {offsets = [2, 0], sizes = [14, 32], strides = [1, 1]} : vector<16x32xf32> to vector<14x32xf32>
    %157 = vector.extract_strided_slice %151 {offsets = [0, 0], sizes = [2, 32], strides = [1, 1]} : vector<16x32xf32> to vector<2x32xf32>
    %158 = tpu.concatenate %156, %157 in 0 : vector<14x32xf32>, vector<2x32xf32> -> vector<16x32xf32>
    %159 = arith.maximumf %155, %158 : vector<16x32xf32>
    %160 = vector.extract_strided_slice %151 {offsets = [3, 0], sizes = [13, 32], strides = [1, 1]} : vector<16x32xf32> to vector<13x32xf32>
    %161 = vector.extract_strided_slice %151 {offsets = [0, 0], sizes = [3, 32], strides = [1, 1]} : vector<16x32xf32> to vector<3x32xf32>
    %162 = tpu.concatenate %160, %161 in 0 : vector<13x32xf32>, vector<3x32xf32> -> vector<16x32xf32>
    %163 = arith.maximumf %159, %162 : vector<16x32xf32>
    %164 = vector.extract_strided_slice %151 {offsets = [4, 0], sizes = [12, 32], strides = [1, 1]} : vector<16x32xf32> to vector<12x32xf32>
    %165 = vector.extract_strided_slice %151 {offsets = [0, 0], sizes = [4, 32], strides = [1, 1]} : vector<16x32xf32> to vector<4x32xf32>
    %166 = tpu.concatenate %164, %165 in 0 : vector<12x32xf32>, vector<4x32xf32> -> vector<16x32xf32>
    %167 = arith.maximumf %163, %166 : vector<16x32xf32>
    %168 = vector.extract_strided_slice %151 {offsets = [5, 0], sizes = [11, 32], strides = [1, 1]} : vector<16x32xf32> to vector<11x32xf32>
    %169 = vector.extract_strided_slice %151 {offsets = [0, 0], sizes = [5, 32], strides = [1, 1]} : vector<16x32xf32> to vector<5x32xf32>
    %170 = tpu.concatenate %168, %169 in 0 : vector<11x32xf32>, vector<5x32xf32> -> vector<16x32xf32>
    %171 = arith.maximumf %167, %170 : vector<16x32xf32>
    %cst_27 = arith.constant dense<0.000000e+00> : vector<2x32xf32>
    %172 = tpu.matmul %32, %171, %cst_27 {dimension_numbers = #tpu.dot_dimension_numbers<[1], [0], [0], [1], [0, 0, 1, 1], [], []>} : vector<2x16xf32>, vector<16x32xf32>, vector<2x32xf32> -> vector<2x32xf32>
    %c0_28 = arith.constant 0 : index
    %c832 = arith.constant 832 : index
    %173 = vector.load %arg4[%c0_28, %c832] : memref<32x1024xbf16, #tpu.memory_space<vmem>>, vector<32x32xbf16>
    %174 = arith.truncf %172 : vector<2x32xf32> to vector<2x32xbf16>
    %cst_29 = arith.constant dense<0.000000e+00> : vector<2x32xf32>
    %175 = tpu.matmul %174, %173, %cst_29 {dimension_numbers = #tpu.dot_dimension_numbers<[1], [0], [0], [1], [0, 0, 1, 1], [], []>} : vector<2x32xbf16>, vector<32x32xbf16>, vector<2x32xf32> -> vector<2x32xf32>
    %c4 = arith.constant 4 : index
    %c0_30 = arith.constant 0 : index
    %176 = vector.load %arg5[%c4, %c0_30] : memref<12x32xf32, #tpu.memory_space<vmem>>, vector<1x32xf32>
    %177 = vector.broadcast %176 : vector<1x32xf32> to vector<2x32xf32>
    %178 = arith.addf %175, %177 : vector<2x32xf32>
    %cst_31 = arith.constant 0.000000e+00 : f32
    %179 = vector.broadcast %cst_31 : f32 to vector<2x32xf32>
    %180 = arith.maximumf %178, %179 : vector<2x32xf32>
    %c0_32 = arith.constant 0 : index
    %c704 = arith.constant 704 : index
    %181 = vector.load %arg4[%c0_32, %c704] : memref<32x1024xbf16, #tpu.memory_space<vmem>>, vector<32x96xbf16>
    %cst_33 = arith.constant dense<0.000000e+00> : vector<32x96xf32>
    %182 = tpu.matmul %7, %181, %cst_33 {dimension_numbers = #tpu.dot_dimension_numbers<[1], [0], [0], [1], [0, 0, 1, 1], [], []>} : vector<32x32xbf16>, vector<32x96xbf16>, vector<32x96xf32> -> vector<32x96xf32>
    %c5 = arith.constant 5 : index
    %c0_34 = arith.constant 0 : index
    %183 = vector.load %arg5[%c5, %c0_34] : memref<12x32xf32, #tpu.memory_space<vmem>>, vector<1x32xf32>
    %184 = vector.extract_strided_slice %182 {offsets = [0, 0], sizes = [32, 32], strides = [1, 1]} : vector<32x96xf32> to vector<32x32xf32>
    %185 = vector.broadcast %183 : vector<1x32xf32> to vector<32x32xf32>
    %186 = arith.addf %185, %184 : vector<32x32xf32>
    %187 = vector.extract_strided_slice %182 {offsets = [1, 0], sizes = [31, 96], strides = [1, 1]} : vector<32x96xf32> to vector<31x96xf32>
    %188 = vector.extract_strided_slice %182 {offsets = [0, 0], sizes = [1, 96], strides = [1, 1]} : vector<32x96xf32> to vector<1x96xf32>
    %189 = tpu.concatenate %187, %188 in 0 : vector<31x96xf32>, vector<1x96xf32> -> vector<32x96xf32>
    %190 = vector.extract_strided_slice %189 {offsets = [0, 32], sizes = [32, 32], strides = [1, 1]} : vector<32x96xf32> to vector<32x32xf32>
    %191 = arith.addf %186, %190 : vector<32x32xf32>
    %192 = vector.extract_strided_slice %182 {offsets = [2, 0], sizes = [30, 96], strides = [1, 1]} : vector<32x96xf32> to vector<30x96xf32>
    %193 = vector.extract_strided_slice %182 {offsets = [0, 0], sizes = [2, 96], strides = [1, 1]} : vector<32x96xf32> to vector<2x96xf32>
    %194 = tpu.concatenate %192, %193 in 0 : vector<30x96xf32>, vector<2x96xf32> -> vector<32x96xf32>
    %195 = vector.extract_strided_slice %194 {offsets = [0, 64], sizes = [32, 32], strides = [1, 1]} : vector<32x96xf32> to vector<32x32xf32>
    %196 = arith.addf %191, %195 : vector<32x32xf32>
    %cst_35 = arith.constant 0.000000e+00 : f32
    %197 = vector.broadcast %cst_35 : f32 to vector<32x32xf32>
    %198 = arith.maximumf %196, %197 : vector<32x32xf32>
    %199 = vector.extract_strided_slice %198 {offsets = [1, 0], sizes = [31, 32], strides = [1, 1]} : vector<32x32xf32> to vector<31x32xf32>
    %200 = vector.extract_strided_slice %198 {offsets = [0, 0], sizes = [1, 32], strides = [1, 1]} : vector<32x32xf32> to vector<1x32xf32>
    %201 = tpu.concatenate %199, %200 in 0 : vector<31x32xf32>, vector<1x32xf32> -> vector<32x32xf32>
    %202 = arith.maximumf %198, %201 : vector<32x32xf32>
    %203 = vector.extract_strided_slice %198 {offsets = [2, 0], sizes = [30, 32], strides = [1, 1]} : vector<32x32xf32> to vector<30x32xf32>
    %204 = vector.extract_strided_slice %198 {offsets = [0, 0], sizes = [2, 32], strides = [1, 1]} : vector<32x32xf32> to vector<2x32xf32>
    %205 = tpu.concatenate %203, %204 in 0 : vector<30x32xf32>, vector<2x32xf32> -> vector<32x32xf32>
    %206 = arith.maximumf %202, %205 : vector<32x32xf32>
    %207 = vector.extract_strided_slice %198 {offsets = [3, 0], sizes = [29, 32], strides = [1, 1]} : vector<32x32xf32> to vector<29x32xf32>
    %208 = vector.extract_strided_slice %198 {offsets = [0, 0], sizes = [3, 32], strides = [1, 1]} : vector<32x32xf32> to vector<3x32xf32>
    %209 = tpu.concatenate %207, %208 in 0 : vector<29x32xf32>, vector<3x32xf32> -> vector<32x32xf32>
    %210 = arith.maximumf %206, %209 : vector<32x32xf32>
    %c0_36 = arith.constant 0 : index
    %c864 = arith.constant 864 : index
    %211 = vector.load %arg4[%c0_36, %c864] : memref<32x1024xbf16, #tpu.memory_space<vmem>>, vector<32x32xbf16>
    %212 = arith.truncf %210 : vector<32x32xf32> to vector<32x32xbf16>
    %cst_37 = arith.constant dense<0.000000e+00> : vector<32x32xf32>
    %213 = tpu.matmul %212, %211, %cst_37 {dimension_numbers = #tpu.dot_dimension_numbers<[1], [0], [0], [1], [0, 0, 1, 1], [], []>} : vector<32x32xbf16>, vector<32x32xbf16>, vector<32x32xf32> -> vector<32x32xf32>
    %c6 = arith.constant 6 : index
    %c0_38 = arith.constant 0 : index
    %214 = vector.load %arg5[%c6, %c0_38] : memref<12x32xf32, #tpu.memory_space<vmem>>, vector<1x32xf32>
    %215 = vector.broadcast %214 : vector<1x32xf32> to vector<32x32xf32>
    %216 = arith.addf %213, %215 : vector<32x32xf32>
    %cst_39 = arith.constant 0.000000e+00 : f32
    %217 = vector.broadcast %cst_39 : f32 to vector<32x32xf32>
    %218 = arith.maximumf %216, %217 : vector<32x32xf32>
    %cst_40 = arith.constant dense<0.000000e+00> : vector<32x32xf32>
    %219 = tpu.matmul %39, %180, %cst_40 {dimension_numbers = #tpu.dot_dimension_numbers<[1], [0], [0], [1], [0, 0, 1, 1], [], []>} : vector<32x2xf32>, vector<2x32xf32>, vector<32x32xf32> -> vector<32x32xf32>
    %220 = arith.mulf %218, %219 : vector<32x32xf32>
    %c0_41 = arith.constant 0 : index
    %c256 = arith.constant 256 : index
    %221 = vector.load %arg4[%c0_41, %c256] : memref<32x1024xbf16, #tpu.memory_space<vmem>>, vector<32x352xbf16>
    %222 = arith.truncf %220 : vector<32x32xf32> to vector<32x32xbf16>
    %cst_42 = arith.constant dense<0.000000e+00> : vector<32x352xf32>
    %223 = tpu.matmul %222, %221, %cst_42 {dimension_numbers = #tpu.dot_dimension_numbers<[1], [0], [0], [1], [0, 0, 1, 1], [], []>} : vector<32x32xbf16>, vector<32x352xbf16>, vector<32x352xf32> -> vector<32x352xf32>
    %224 = vector.extract_strided_slice %223 {offsets = [0, 0], sizes = [32, 32], strides = [1, 1]} : vector<32x352xf32> to vector<32x32xf32>
    %c0_i32_43 = arith.constant 0 : i32
    %225 = vector.broadcast %c0_i32_43 : i32 to vector<32x1xi32>
    %226 = arith.cmpi eq, %45, %225 : vector<32x1xi32>
    %227 = arith.extui %226 : vector<32x1xi1> to vector<32x1xi32>
    %228 = arith.sitofp %227 : vector<32x1xi32> to vector<32x1xf32>
    %229 = vector.broadcast %228 : vector<32x1xf32> to vector<32x32xf32>
    %230 = arith.mulf %224, %229 : vector<32x32xf32>
    %231 = vector.extract_strided_slice %223 {offsets = [0, 32], sizes = [32, 32], strides = [1, 1]} : vector<32x352xf32> to vector<32x32xf32>
    %c1_i32_44 = arith.constant 1 : i32
    %232 = vector.broadcast %c1_i32_44 : i32 to vector<32x1xi32>
    %233 = arith.cmpi eq, %45, %232 : vector<32x1xi32>
    %234 = arith.extui %233 : vector<32x1xi1> to vector<32x1xi32>
    %235 = arith.sitofp %234 : vector<32x1xi32> to vector<32x1xf32>
    %236 = vector.broadcast %235 : vector<32x1xf32> to vector<32x32xf32>
    %237 = arith.mulf %231, %236 : vector<32x32xf32>
    %238 = arith.addf %230, %237 : vector<32x32xf32>
    %239 = vector.extract_strided_slice %223 {offsets = [0, 64], sizes = [32, 32], strides = [1, 1]} : vector<32x352xf32> to vector<32x32xf32>
    %c2_i32_45 = arith.constant 2 : i32
    %240 = vector.broadcast %c2_i32_45 : i32 to vector<32x1xi32>
    %241 = arith.cmpi eq, %45, %240 : vector<32x1xi32>
    %242 = arith.extui %241 : vector<32x1xi1> to vector<32x1xi32>
    %243 = arith.sitofp %242 : vector<32x1xi32> to vector<32x1xf32>
    %244 = vector.broadcast %243 : vector<32x1xf32> to vector<32x32xf32>
    %245 = arith.mulf %239, %244 : vector<32x32xf32>
    %246 = arith.addf %238, %245 : vector<32x32xf32>
    %247 = vector.extract_strided_slice %223 {offsets = [0, 96], sizes = [32, 32], strides = [1, 1]} : vector<32x352xf32> to vector<32x32xf32>
    %c3_i32_46 = arith.constant 3 : i32
    %248 = vector.broadcast %c3_i32_46 : i32 to vector<32x1xi32>
    %249 = arith.cmpi eq, %45, %248 : vector<32x1xi32>
    %250 = arith.extui %249 : vector<32x1xi1> to vector<32x1xi32>
    %251 = arith.sitofp %250 : vector<32x1xi32> to vector<32x1xf32>
    %252 = vector.broadcast %251 : vector<32x1xf32> to vector<32x32xf32>
    %253 = arith.mulf %247, %252 : vector<32x32xf32>
    %254 = arith.addf %246, %253 : vector<32x32xf32>
    %255 = vector.extract_strided_slice %223 {offsets = [0, 128], sizes = [32, 32], strides = [1, 1]} : vector<32x352xf32> to vector<32x32xf32>
    %c4_i32_47 = arith.constant 4 : i32
    %256 = vector.broadcast %c4_i32_47 : i32 to vector<32x1xi32>
    %257 = arith.cmpi eq, %45, %256 : vector<32x1xi32>
    %258 = arith.extui %257 : vector<32x1xi1> to vector<32x1xi32>
    %259 = arith.sitofp %258 : vector<32x1xi32> to vector<32x1xf32>
    %260 = vector.broadcast %259 : vector<32x1xf32> to vector<32x32xf32>
    %261 = arith.mulf %255, %260 : vector<32x32xf32>
    %262 = arith.addf %254, %261 : vector<32x32xf32>
    %263 = vector.extract_strided_slice %223 {offsets = [0, 160], sizes = [32, 32], strides = [1, 1]} : vector<32x352xf32> to vector<32x32xf32>
    %c5_i32_48 = arith.constant 5 : i32
    %264 = vector.broadcast %c5_i32_48 : i32 to vector<32x1xi32>
    %265 = arith.cmpi eq, %45, %264 : vector<32x1xi32>
    %266 = arith.extui %265 : vector<32x1xi1> to vector<32x1xi32>
    %267 = arith.sitofp %266 : vector<32x1xi32> to vector<32x1xf32>
    %268 = vector.broadcast %267 : vector<32x1xf32> to vector<32x32xf32>
    %269 = arith.mulf %263, %268 : vector<32x32xf32>
    %270 = arith.addf %262, %269 : vector<32x32xf32>
    %271 = vector.extract_strided_slice %223 {offsets = [0, 192], sizes = [32, 32], strides = [1, 1]} : vector<32x352xf32> to vector<32x32xf32>
    %c6_i32_49 = arith.constant 6 : i32
    %272 = vector.broadcast %c6_i32_49 : i32 to vector<32x1xi32>
    %273 = arith.cmpi eq, %45, %272 : vector<32x1xi32>
    %274 = arith.extui %273 : vector<32x1xi1> to vector<32x1xi32>
    %275 = arith.sitofp %274 : vector<32x1xi32> to vector<32x1xf32>
    %276 = vector.broadcast %275 : vector<32x1xf32> to vector<32x32xf32>
    %277 = arith.mulf %271, %276 : vector<32x32xf32>
    %278 = arith.addf %270, %277 : vector<32x32xf32>
    %279 = vector.extract_strided_slice %223 {offsets = [0, 224], sizes = [32, 32], strides = [1, 1]} : vector<32x352xf32> to vector<32x32xf32>
    %c7_i32_50 = arith.constant 7 : i32
    %280 = vector.broadcast %c7_i32_50 : i32 to vector<32x1xi32>
    %281 = arith.cmpi eq, %45, %280 : vector<32x1xi32>
    %282 = arith.extui %281 : vector<32x1xi1> to vector<32x1xi32>
    %283 = arith.sitofp %282 : vector<32x1xi32> to vector<32x1xf32>
    %284 = vector.broadcast %283 : vector<32x1xf32> to vector<32x32xf32>
    %285 = arith.mulf %279, %284 : vector<32x32xf32>
    %286 = arith.addf %278, %285 : vector<32x32xf32>
    %287 = vector.extract_strided_slice %223 {offsets = [0, 256], sizes = [32, 32], strides = [1, 1]} : vector<32x352xf32> to vector<32x32xf32>
    %c8_i32_51 = arith.constant 8 : i32
    %288 = vector.broadcast %c8_i32_51 : i32 to vector<32x1xi32>
    %289 = arith.cmpi eq, %45, %288 : vector<32x1xi32>
    %290 = arith.extui %289 : vector<32x1xi1> to vector<32x1xi32>
    %291 = arith.sitofp %290 : vector<32x1xi32> to vector<32x1xf32>
    %292 = vector.broadcast %291 : vector<32x1xf32> to vector<32x32xf32>
    %293 = arith.mulf %287, %292 : vector<32x32xf32>
    %294 = arith.addf %286, %293 : vector<32x32xf32>
    %295 = vector.extract_strided_slice %223 {offsets = [0, 288], sizes = [32, 32], strides = [1, 1]} : vector<32x352xf32> to vector<32x32xf32>
    %c9_i32 = arith.constant 9 : i32
    %296 = vector.broadcast %c9_i32 : i32 to vector<32x1xi32>
    %297 = arith.cmpi eq, %45, %296 : vector<32x1xi32>
    %298 = arith.extui %297 : vector<32x1xi1> to vector<32x1xi32>
    %299 = arith.sitofp %298 : vector<32x1xi32> to vector<32x1xf32>
    %300 = vector.broadcast %299 : vector<32x1xf32> to vector<32x32xf32>
    %301 = arith.mulf %295, %300 : vector<32x32xf32>
    %302 = arith.addf %294, %301 : vector<32x32xf32>
    %303 = vector.extract_strided_slice %223 {offsets = [0, 320], sizes = [32, 32], strides = [1, 1]} : vector<32x352xf32> to vector<32x32xf32>
    %c10_i32 = arith.constant 10 : i32
    %304 = vector.broadcast %c10_i32 : i32 to vector<32x1xi32>
    %305 = arith.cmpi eq, %45, %304 : vector<32x1xi32>
    %306 = arith.extui %305 : vector<32x1xi1> to vector<32x1xi32>
    %307 = arith.sitofp %306 : vector<32x1xi32> to vector<32x1xf32>
    %308 = vector.broadcast %307 : vector<32x1xf32> to vector<32x32xf32>
    %309 = arith.mulf %303, %308 : vector<32x32xf32>
    %310 = arith.addf %302, %309 : vector<32x32xf32>
    %cst_52 = arith.constant dense<0.000000e+00> : vector<2x32xf32>
    %311 = tpu.matmul %25, %310, %cst_52 {dimension_numbers = #tpu.dot_dimension_numbers<[1], [0], [0], [1], [0, 0, 1, 1], [], []>} : vector<2x32xf32>, vector<32x32xf32>, vector<2x32xf32> -> vector<2x32xf32>
    %c7 = arith.constant 7 : index
    %c0_53 = arith.constant 0 : index
    %312 = vector.load %arg5[%c7, %c0_53] : memref<12x32xf32, #tpu.memory_space<vmem>>, vector<1x32xf32>
    %313 = vector.broadcast %312 : vector<1x32xf32> to vector<2x32xf32>
    %314 = arith.addf %311, %313 : vector<2x32xf32>
    %cst_54 = arith.constant 0.000000e+00 : f32
    %315 = vector.broadcast %cst_54 : f32 to vector<2x32xf32>
    %316 = arith.maximumf %314, %315 : vector<2x32xf32>
    %c0_55 = arith.constant 0 : index
    %c896 = arith.constant 896 : index
    %317 = vector.load %arg4[%c0_55, %c896] : memref<32x1024xbf16, #tpu.memory_space<vmem>>, vector<32x32xbf16>
    %318 = arith.truncf %316 : vector<2x32xf32> to vector<2x32xbf16>
    %cst_56 = arith.constant dense<0.000000e+00> : vector<2x32xf32>
    %319 = tpu.matmul %318, %317, %cst_56 {dimension_numbers = #tpu.dot_dimension_numbers<[1], [0], [0], [1], [0, 0, 1, 1], [], []>} : vector<2x32xbf16>, vector<32x32xbf16>, vector<2x32xf32> -> vector<2x32xf32>
    %c8 = arith.constant 8 : index
    %c0_57 = arith.constant 0 : index
    %320 = vector.load %arg5[%c8, %c0_57] : memref<12x32xf32, #tpu.memory_space<vmem>>, vector<1x32xf32>
    %321 = vector.broadcast %320 : vector<1x32xf32> to vector<2x32xf32>
    %322 = arith.addf %319, %321 : vector<2x32xf32>
    %cst_58 = arith.constant 0.000000e+00 : f32
    %323 = vector.broadcast %cst_58 : f32 to vector<2x32xf32>
    %324 = arith.maximumf %322, %323 : vector<2x32xf32>
    %325 = arith.addf %133, %324 : vector<2x32xf32>
    %c0_59 = arith.constant 0 : index
    %c928 = arith.constant 928 : index
    %326 = vector.load %arg4[%c0_59, %c928] : memref<32x1024xbf16, #tpu.memory_space<vmem>>, vector<32x32xbf16>
    %327 = arith.truncf %325 : vector<2x32xf32> to vector<2x32xbf16>
    %cst_60 = arith.constant dense<0.000000e+00> : vector<2x32xf32>
    %328 = tpu.matmul %327, %326, %cst_60 {dimension_numbers = #tpu.dot_dimension_numbers<[1], [0], [0], [1], [0, 0, 1, 1], [], []>} : vector<2x32xbf16>, vector<32x32xbf16>, vector<2x32xf32> -> vector<2x32xf32>
    %c9 = arith.constant 9 : index
    %c0_61 = arith.constant 0 : index
    %329 = vector.load %arg5[%c9, %c0_61] : memref<12x32xf32, #tpu.memory_space<vmem>>, vector<1x32xf32>
    %330 = vector.broadcast %329 : vector<1x32xf32> to vector<2x32xf32>
    %331 = arith.addf %328, %330 : vector<2x32xf32>
    %cst_62 = arith.constant 0.000000e+00 : f32
    %332 = vector.broadcast %cst_62 : f32 to vector<2x32xf32>
    %333 = arith.maximumf %331, %332 : vector<2x32xf32>
    %c0_63 = arith.constant 0 : index
    %c960 = arith.constant 960 : index
    %334 = vector.load %arg4[%c0_63, %c960] : memref<32x1024xbf16, #tpu.memory_space<vmem>>, vector<32x32xbf16>
    %335 = arith.truncf %333 : vector<2x32xf32> to vector<2x32xbf16>
    %cst_64 = arith.constant dense<0.000000e+00> : vector<2x32xf32>
    %336 = tpu.matmul %335, %334, %cst_64 {dimension_numbers = #tpu.dot_dimension_numbers<[1], [0], [0], [1], [0, 0, 1, 1], [], []>} : vector<2x32xbf16>, vector<32x32xbf16>, vector<2x32xf32> -> vector<2x32xf32>
    %c10 = arith.constant 10 : index
    %c0_65 = arith.constant 0 : index
    %337 = vector.load %arg5[%c10, %c0_65] : memref<12x32xf32, #tpu.memory_space<vmem>>, vector<1x32xf32>
    %338 = vector.broadcast %337 : vector<1x32xf32> to vector<2x32xf32>
    %339 = arith.addf %336, %338 : vector<2x32xf32>
    %cst_66 = arith.constant 0.000000e+00 : f32
    %340 = vector.broadcast %cst_66 : f32 to vector<2x32xf32>
    %341 = arith.maximumf %339, %340 : vector<2x32xf32>
    %c0_67 = arith.constant 0 : index
    %c992 = arith.constant 992 : index
    %342 = vector.load %arg4[%c0_67, %c992] : memref<32x1024xbf16, #tpu.memory_space<vmem>>, vector<32x32xbf16>
    %343 = arith.truncf %341 : vector<2x32xf32> to vector<2x32xbf16>
    %cst_68 = arith.constant dense<0.000000e+00> : vector<2x32xf32>
    %344 = tpu.matmul %343, %342, %cst_68 {dimension_numbers = #tpu.dot_dimension_numbers<[1], [0], [0], [1], [0, 0, 1, 1], [], []>} : vector<2x32xbf16>, vector<32x32xbf16>, vector<2x32xf32> -> vector<2x32xf32>
    %c11 = arith.constant 11 : index
    %c0_69 = arith.constant 0 : index
    %345 = vector.load %arg5[%c11, %c0_69] : memref<12x32xf32, #tpu.memory_space<vmem>>, vector<1x32xf32>
    %346 = vector.broadcast %345 : vector<1x32xf32> to vector<2x32xf32>
    %347 = arith.addf %344, %346 : vector<2x32xf32>
    %cst_70 = arith.constant 0.000000e+00 : f32
    %348 = vector.broadcast %cst_70 : f32 to vector<2x32xf32>
    %349 = arith.maximumf %347, %348 : vector<2x32xf32>
    %350 = tpu.concatenate %349, %325, %133, %324 in 1 : vector<2x32xf32>, vector<2x32xf32>, vector<2x32xf32>, vector<2x32xf32> -> vector<2x128xf32>
    %c0_71 = arith.constant 0 : index
    %c0_72 = arith.constant 0 : index
    %351 = vector.load %arg6[%c0_71, %c0_72] : memref<2x128xf32, #tpu.memory_space<vmem>>, vector<2x128xf32>
    tpu.vector_store %arg6[%c0_71, %c0_72], %350 {strides = array<i32>} : memref<2x128xf32, #tpu.memory_space<vmem>>, vector<2x128xf32>,
    return
  }
  func.func @transform_0(%arg0: i32) -> (i32, i32) {
    %c0_i32 = arith.constant 0 : i32
    %c0_i32_0 = arith.constant 0 : i32
    return %arg0, %c0_i32 : i32, i32
  }
  func.func @transform_1(%arg0: i32) -> (i32, i32) {
    %c0_i32 = arith.constant 0 : i32
    %c0_i32_0 = arith.constant 0 : i32
    return %arg0, %c0_i32 : i32, i32
  }
  func.func @transform_2(%arg0: i32) -> (i32, i32) {
    %c0_i32 = arith.constant 0 : i32
    %c0_i32_0 = arith.constant 0 : i32
    %c0_i32_1 = arith.constant 0 : i32
    return %c0_i32, %c0_i32_0 : i32, i32
  }
  func.func @transform_3(%arg0: i32) -> (i32, i32) {
    %c0_i32 = arith.constant 0 : i32
    %c0_i32_0 = arith.constant 0 : i32
    %c0_i32_1 = arith.constant 0 : i32
    return %c0_i32, %c0_i32_0 : i32, i32
  }
  func.func @transform_4(%arg0: i32) -> (i32, i32) {
    %c0_i32 = arith.constant 0 : i32
    %c0_i32_0 = arith.constant 0 : i32
    %c0_i32_1 = arith.constant 0 : i32
    return %c0_i32, %c0_i32_0 : i32, i32
  }
  func.func @transform_5(%arg0: i32) -> (i32, i32) {
    %c0_i32 = arith.constant 0 : i32
    %c0_i32_0 = arith.constant 0 : i32
    return %arg0, %c0_i32 : i32, i32
  }
}

</mosaic_0001>

<bundles_post_ra>
// kernel: duet_forward.1
= control target key start
LH: loop header
LB: loop body
LE: loop exit
PB: predicated region body
PF: predicated region fallthrough
CT: control target
= control target key end

     0   :  { %vm33_vm0 = vcmask 261120   ;;  %v2520_v0 = vmov 0.0|0.0   ;;  %vm2521_vm2 = vmmov 0   ;;  %v2522_v2 = vmov 0.0   ;;  %s2524_s8 = smov 64   ;;  %s2525_s9 = smov 96   ;;  %s3112_s1 = inlined_call_operand.vmem [shape: bf16[32,64], index: 1, kind: input, shape index: {}]   ;;  %s3113_s0 = inlined_call_operand.vmem [shape: bf16[16,64], index: 0, kind: input, shape index: {}]   ;;  %s3114_s2 = inlined_call_operand.vmem [shape: bf16[16,32], index: 2, kind: input, shape index: {}]   ;;  %s3115_s3 = inlined_call_operand.vmem [shape: bf16[32,1024], index: 3, kind: input, shape index: {}]   ;;  %s3116_s4 = inlined_call_operand.vmem [shape: f32[12,32], index: 4, kind: input, shape index: {}]   ;;  %s3117_s5 = inlined_call_operand.vmem [shape: f32[2,128], index: 5, kind: output, shape index: {}]  }
   0x1   :  { %2486 = vmatprep.subr.bf16.mxu0 %v2520_v0  ;;  %2490 = vmatprep.subr.bf16.mxu1 %v2520_v0  ;;  %v2562_v1 = vld [vmem:[%s3112_s1] sm:$0xff]   ;;  %vm2488_vm1 = vmpackc.low %vm33_vm0, %vm33_vm0  ;;  %v2574_v3 = vld [vmem:[%s3112_s1 + $0x8] sm:$0xff]   ;;  %vm247_vm3 = vcmask 130048   ;;  %v2523_v21 = vmov 0   ;;  %v192_v32 = vlaneseq  ;;  %s2526_s10 = smov 32  }
   0x2   :  { %2357 = vmatprep.mubr.msk.f32.mxu0 %vm2521_vm2, %v2522_v2  ;;  %2364 = vmatprep.mubr.msk.f32.mxu1 %vm2521_vm2, %v2522_v2  ;;  %v2579_v4 = vld [vmem:[%s3113_s0] sm:$0xff]  }
   0x3   :  { %2489 = vmatpush3.bf16.xpose.msk.msra.mxu0 %vm2488_vm1, %v2562_v1  ;;  %2493 = vmatpush3.bf16.xpose.msk.msra.mxu1 %vm2488_vm1, %v2574_v3  ;;  %v27_v5 = vunpack.c.l.bf16 %v2579_v4  ;;  %v28_v6 = vunpack.c.h.bf16 %v2579_v4  ;;  %v2517_v7 = vld [vmem:[%s3114_s2] sm:$0xff]   ;;  %v2617_v33 = vshrl.u32 %v192_v32, 7 }
   0x4   :  { %2367 = vmatprep.subr.bf16.mxu0 %v2522_v2  ;;  %v294_v13 = vld [vmem:[%s3115_s3] sm:$0xff] }
   0x5   :  { %v295_v14 = vld [vmem:[%s3115_s3 + $0x20] sm:$0xff]  ;;  %v2620_v34 = vadd.s32 8, %v2617_v33  ;;  %v227_v35 = vand.u32 7, %v2617_v33 }
   0x6   :  { %v2199_v15 = vcombine.high %v294_v13, %v295_v14  ;;  %v2198_v16 = vcombine.low %v294_v13, %v295_v14  ;;  %v296_v17 = vld [vmem:[%s3115_s3 + $0x40] sm:$0xff]  ;;  %v641_v13 = vld [vmem:[%s3115_s3 + $0x30] sm:$0xff] }
   0x7   :  { %v297_v18 = vld [vmem:[%s3115_s3 + $0x60] sm:$0xff]  ;;  %v228_v36 = vand.u32 7, %v2620_v34  ;;  %vm391_vm4 = vcmp.eq.s32.totalorder %v227_v35, 2  ;;  %vm373_vm5 = vcmp.eq.s32.totalorder %v227_v35, 1  ;;  %vm365_vm6 = vcmp.eq.s32.totalorder %v227_v35, 0 }
   0x8   :  { %322 = vmatprep.subr.bf16.mxu1 %v2199_v15  ;;  %v2201_v19 = vcombine.high %v296_v17, %v297_v18  ;;  %v2200_v20 = vcombine.low %v296_v17, %v297_v18  ;;  %v2195_v22 = vld [vmem:[%s3116_s4] ss:$0 sm:$0xff]  ;;  %vm427_vm7 = vcmp.eq.s32.totalorder %v227_v35, 4  ;;  %v2207_v37 = vsel %vm391_vm4, 1.0, %v2522_v2  ;;  %v642_v18 = vld [vmem:[%s3115_s3 + $0x50] sm:$0xff] }
   0x9   :  { %v2205_v38 = vsel %vm373_vm5, 1.0, %v2522_v2  ;;  %v2203_v39 = vsel %vm365_vm6, 1.0, %v2522_v2  ;;  %vm366_vm8 = vcmp.eq.s32.totalorder %v228_v36, 0  ;;  %vm409_vm9 = vcmp.eq.s32.totalorder %v227_v35, 3 }
   0xa   :  { %2358 = vmatmul.mubr.msk.f32.vlgmr.msra.gmra.mrb[0].mxu0 %vm33_vm0, %v27_v5  ;;  %2365 = vmatmul.mubr.msk.f32.vlgmr.msra.gmra.mrb[0].mxu1 %vm33_vm0, %v28_v6  ;;  %vm392_vm10 = vcmp.eq.s32.totalorder %v228_v36, 2  ;;  %v2211_v40 = vsel %vm427_vm7, 1.0, %v2522_v2  ;;  %vm428_vm11 = vcmp.eq.s32.totalorder %v228_v36, 4  ;;  %v2204_v46 = vsel %vm366_vm8, 1.0, %v2522_v2 }
   0xb   :  { %2369 = vmatprep.mubr.msk.bf16.mxu0 %vm2521_vm2, %v2522_v2  ;;  %2368 = vmatpush3.bf16.msra.mxu0 %v2517_v7  ;;  %v2209_v48 = vsel %vm409_vm9, 1.0, %v2522_v2  ;;  %v2208_v49 = vsel %vm392_vm10, 1.0, %v2522_v2  ;;  %v2212_v51 = vsel %vm428_vm11, 1.0, %v2522_v2  ;;  %vm410_vm12 = vcmp.eq.s32.totalorder %v228_v36, 3 }
   0xc   :  { %2494 = vmatprep.subr.bf16.mxu0 %v2520_v0  ;;  %323 = vmatpush1.bf16.msra.mxu1 %v2198_v16  ;;  %vm374_vm13 = vcmp.eq.s32.totalorder %v228_v36, 1  ;;  %v2210_v57 = vsel %vm410_vm12, 1.0, %v2522_v2  ;;  %vm437_vm14 = vcmp.eq.s32.totalorder %v227_v35, 5  ;;  %vm438_vm15 = vcmp.eq.s32.totalorder %v228_v36, 5 }
   0xd   :  { %324 = vmatprep.subr.bf16.mxu1 %v2201_v19  ;;  %354 = vmatprep.mubr.bf16.mxu1 %v2523_v21  ;;  %v2206_v58 = vsel %vm374_vm13, 1.0, %v2522_v2  ;;  %v2213_v61 = vsel %vm437_vm14, 1.0, %v2522_v2  ;;  %v2214_v62 = vsel %vm438_vm15, 1.0, %v2522_v2  ;;  %vm455_vm1 = vcmp.eq.s32.totalorder %v227_v35, 6  ;;  %v643_v19 = vld [vmem:[%s3115_s3 + $0x70] sm:$0xff] }
   0xe   :  { %vm456_vm4 = vcmp.eq.s32.totalorder %v228_v36, 6  ;;  %v2215_v6 = vsel %vm455_vm1, 1.0, %v2522_v2  ;;  %vm473_vm5 = vcmp.eq.s32.totalorder %v227_v35, 7  ;;  %vm474_vm6 = vcmp.eq.s32.totalorder %v228_v36, 7 }
   0xf   :  { %v2216_v7 = vsel %vm456_vm4, 1.0, %v2522_v2  ;;  %vm733_vm8 = vcmask 1046528   ;;  %vm749_vm9 = vcmask 1045504   ;;  %vm787_vm10 = vcmask 1044480  }
  0x10   :  { %325 = vmatpush1.bf16.msra.mxu1 %v2200_v20  ;;  %v2228_v20 = vcombine.low %v642_v18, %v643_v19  ;;  %vm797_vm11 = vcmask 1043456   ;;  %vm807_vm12 = vcmask 1042432   ;;  %vm988_vm13 = vcmask 523264  }
  0x11   :  { %2380 = vmatprep.subr.bf16.mxu1 %v2522_v2  ;;  %vm1259_vm4 = vcmask 1041408  }
  0xdd   :  { %v109_v8 = vpop.f32.mrb[0].mxu0  ;;  %v188_v10 = vpop.f32.mrb[0].mxu1 }
  0xde   :  { %v2359_v9 = vpop.f32.mrb[1].mxu0  ;;  %v235_v11 = vpack.c.bf16 %v188_v10, %v109_v8  ;;  %v2366_v12 = vpop.f32.mrb[1].mxu1  ;;  %v2217_v10 = vsel %vm473_vm5, 1.0, %v2522_v2 }
  0xdf   :  { %v640_v12 = vld [vmem:[%s3115_s3 + $0x10] sm:$0xff] }
  0xe0   :  { %2370 = vmatmul.mubr.msk.bf16.vlgmr.msra.gmra.mrb[4].mxu0 %vm247_vm3, %v235_v11  ;;  %v2218_v11 = vsel %vm474_vm6, 1.0, %v2522_v2  ;;  %v2226_v16 = vcombine.low %v640_v12, %v641_v13  ;;  %v2227_v17 = vcombine.high %v640_v12, %v641_v13 }
  0xe1   :  { %2377 = vmatprep.mubr.msk.f32.mxu0 %vm2521_vm2, %v2522_v2 }
 0x1b3   :  { %v285_v23 = vpop.f32.mrb[4].mxu0 }
 0x1b4   :  { %v286_v24 = vadd.f32 %v2195_v22, %v285_v23  ;;  %v2371_v25 = vpop.f32.mrb[5].mxu0 }
 0x1b5   :  { %v288_v26 = vpop.f32.mrb[6].mxu0 }
 0x1b6   :  { %v289_v27 = vadd.f32 %v2195_v22, %v288_v26  ;;  %v2372_v28 = vpop.f32.mrb[7].mxu0  ;;  %v292_v29 = vmax.f32 %v286_v24, 0.0  ;;  %v2229_v22 = vcombine.high %v642_v18, %v643_v19  ;;  %v572_v18 = vld [vmem:[%s3115_s3 + $0x58] sm:$0xf] }
 0x1b7   :  { %v573_v19 = vld [vmem:[%s3115_s3 + $0x78] sm:$0xf] }
 0x1b8   :  { %v293_v30 = vmax.f32 %v289_v27, 0.0 }
 0x1ba   :  { %v298_v31 = vpack.c.bf16 %v293_v30, %v292_v29 }
 0x1bc   :  { %2202 = vmatmul.mubr.msk.bf16.vlgmr.msra.gmra.mrb[4].mxu1 %vm33_vm0, %v298_v31 }
 0x1bd   :  { %2384 = vmatprep.mubr.msk.bf16.mxu1 %vm2521_vm2, %v2522_v2 }
 0x28f   :  { %v356_v41 = vpop.f32.mrb[4].mxu1 }
 0x290   :  { %v358_v42 = vpop.f32.mrb[5].mxu1  ;;  %v397_v43 = vmul.f32 %v2207_v37, %v356_v41  ;;  %v379_v44 = vmul.f32 %v2205_v38, %v356_v41  ;;  %v2628_v45 = vmul.f32 %v2203_v39, %v356_v41  ;;  %v415_v54 = vmul.f32 %v2209_v48, %v356_v41 }
 0x291   :  { %v360_v47 = vpop.f32.mrb[6].mxu1  ;;  %v2633_v50 = vmul.f32 %v2211_v40, %v358_v42  ;;  %v443_v63 = vmul.f32 %v2213_v61, %v358_v42  ;;  %v461_v8 = vmul.f32 %v2215_v6, %v358_v42  ;;  %v479_v14 = vmul.f32 %v2217_v10, %v358_v42 }
 0x292   :  { %401 = vrot.lane.b32.xlu1 %v397_v43, %s2524_s8  ;;  %383 = vrot.lane.b32.xlu0 %v379_v44, %s2525_s9  ;;  %v362_v52 = vpop.f32.mrb[7].mxu1  ;;  %v372_v53 = vmul.f32 %v2204_v46, %v360_v47  ;;  %v398_v55 = vmul.f32 %v2208_v49, %v360_v47  ;;  %v416_v59 = vmul.f32 %v2210_v57, %v360_v47  ;;  %v2679_v41 = vand.u32 127, %v192_v32 }
 0x293   :  { %v2638_v56 = vmul.f32 %v2212_v51, %v362_v52  ;;  %v380_v60 = vmul.f32 %v2206_v58, %v360_v47  ;;  %v444_v5 = vmul.f32 %v2214_v62, %v362_v52  ;;  %v462_v9 = vmul.f32 %v2216_v7, %v362_v52 }
 0x294   :  { %v480_v15 = vmul.f32 %v2218_v11, %v362_v52  ;;  %v194_v46 = vshra.s32 %v2679_v41, 3 }
 0x296   :  { %419 = vrot.lane.b32.xlu0 %v415_v54, %s2526_s10  ;;  %403 = vrot.lane.b32.xlu1 %v398_v55, %s2524_s8  ;;  %vm197_vm7 = vcmp.eq.s32.totalorder %v194_v46, %v2617_v33 }
 0x297   :  { %v2188_v55 = vsel %vm197_vm7, 1.0, %v2522_v2 }
 0x29a   :  { %421 = vrot.lane.b32.xlu1 %v416_v59, %s2526_s10  ;;  %385 = vrot.lane.b32.xlu0 %v380_v60, %s2525_s9 }
 0x29e   :  { %447 = vrot.lane.b32.xlu0 %v443_v63, %s2525_s9  ;;  %449 = vrot.lane.b32.xlu1 %v444_v5, %s2525_s9 }
 0x2a2   :  { %465 = vrot.lane.b32.xlu0 %v461_v8, %s2524_s8  ;;  %467 = vrot.lane.b32.xlu1 %v462_v9, %s2524_s8 }
 0x2a6   :  { %483 = vrot.lane.b32.xlu0 %v479_v14, %s2526_s10  ;;  %485 = vrot.lane.b32.xlu1 %v480_v15, %s2526_s10 }
 0x2aa   :  { %667 = vrot.lane.b32.xlu0 %v2226_v16, %s2526_s10  ;;  %669 = vrot.lane.b32.xlu1 %v2227_v17, %s2526_s10  ;;  %v570_v16 = vld [vmem:[%s3115_s3 + $0x18] sm:$0xf] }
 0x2ab   :  { %v571_v17 = vld [vmem:[%s3115_s3 + $0x38] sm:$0xf] }
 0x2ae   :  { %671 = vrot.lane.b32.xlu0 %v2228_v20, %s2526_s10  ;;  %673 = vrot.lane.b32.xlu1 %v2229_v22, %s2526_s10  ;;  %v2716_v20 = vcombine.low %v570_v16, %v571_v17  ;;  %v2718_v22 = vcombine.low %v572_v18, %v573_v19  ;;  %v204_v19 = vmul.u32 8, %v2617_v33 }
 0x2b0   :  { %vm205_vm14 = vcmp.eq.s32.totalorder %v2679_v41, %v204_v19 }
 0x2b2   :  { %649 = vrot.lane.b32.xlu0 %v2579_v4, %s2525_s9 }
 0x304   :  { %v402_v23 = vpop.permute.xlu1 %401  ;;  %v384_v24 = vpop.permute.xlu0 %383 }
 0x305   :  { %v389_v25 = vadd.f32 %v384_v24, %v2628_v45  ;;  %v947_v24 = vld [vmem:[%s3115_s3 + $0x34] sm:$0xff] }
 0x307   :  { %v407_v26 = vadd.f32 %v402_v23, %v389_v25  ;;  %v946_v23 = vld [vmem:[%s3115_s3 + $0x14] sm:$0xff] }
 0x308   :  { %v420_v27 = vpop.permute.xlu0 %419  ;;  %v404_v28 = vpop.permute.xlu1 %403  ;;  %v2238_v25 = vcombine.high %v946_v23, %v947_v24 }
 0x309   :  { %v425_v29 = vadd.f32 %v420_v27, %v407_v26  ;;  %v2237_v26 = vcombine.low %v946_v23, %v947_v24  ;;  %v948_v27 = vld [vmem:[%s3115_s3 + $0x54] sm:$0xff] }
 0x30b   :  { %v435_v30 = vadd.f32 %v2633_v50, %v425_v29 }
 0x30c   :  { %v422_v31 = vpop.permute.xlu1 %421  ;;  %v386_v35 = vpop.permute.xlu0 %385 }
 0x30d   :  { %v390_v36 = vadd.f32 %v386_v35, %v372_v53 }
 0x30f   :  { %v408_v37 = vadd.f32 %v404_v28, %v390_v36  ;;  %v949_v28 = vld [vmem:[%s3115_s3 + $0x74] sm:$0xff] }
 0x310   :  { %v448_v38 = vpop.permute.xlu0 %447  ;;  %v450_v39 = vpop.permute.xlu1 %449  ;;  %v2240_v29 = vcombine.high %v948_v27, %v949_v28 }
 0x311   :  { %v426_v40 = vadd.f32 %v422_v31, %v408_v37  ;;  %v453_v44 = vadd.f32 %v448_v38, %v435_v30  ;;  %v2239_v30 = vcombine.low %v948_v27, %v949_v28  ;;  %v2231_v31 = vld [vmem:[%s3116_s4 + $0x3] ss:$0 sm:$0xff]  ;;  %v2219_v37 = vld [vmem:[%s3116_s4 + $0x1] ss:$0 sm:$0xff] }
 0x313   :  { %v436_v4 = vadd.f32 %v2638_v56, %v426_v40 }
 0x314   :  { %v466_v42 = vpop.permute.xlu0 %465  ;;  %v468_v43 = vpop.permute.xlu1 %467 }
 0x315   :  { %v454_v45 = vadd.f32 %v450_v39, %v436_v4  ;;  %v471_v47 = vadd.f32 %v466_v42, %v453_v44 }
 0x317   :  { %v472_v48 = vadd.f32 %v468_v43, %v454_v45 }
 0x318   :  { %v484_v49 = vpop.permute.xlu0 %483  ;;  %v486_v50 = vpop.permute.xlu1 %485 }
 0x319   :  { %v489_v51 = vadd.f32 %v484_v49, %v471_v47  ;;  %v490_v52 = vadd.f32 %v486_v50, %v472_v48 }
 0x31b   :  { %v2495_v53 = vpack.c.bf16 %v490_v52, %v489_v51 }
 0x31c   :  { %v668_v54 = vpop.permute.xlu0 %667  ;;  %v670_v32 = vpop.permute.xlu1 %669 }
 0x31d   :  { %2496 = vmatpush3.bf16.msra.mxu0 %v2495_v53  ;;  %v676_v56 = vsel %vm33_vm0, %v668_v54, %v670_v32 }
 0x31e   :  { %2388 = vmatprep.subr.bf16.mxu0 %v2522_v2 }
 0x320   :  { %2378 = vmatmul.mubr.msk.f32.vlgmr.msra.gmra.mrb[2].mxu0 %vm247_vm3, %v2188_v55  ;;  %v672_v57 = vpop.permute.xlu0 %671  ;;  %v674_v58 = vpop.permute.xlu1 %673 }
 0x321   :  { %2389 = vmatpush3.bf16.msra.mxu0 %v676_v56  ;;  %2392 = vmatprep.mubr.msk.bf16.mxu0 %vm2521_vm2, %v2522_v2  ;;  %v677_v59 = vsel %vm33_vm0, %v672_v57, %v674_v58 }
 0x322   :  { %2390 = vmatprep.subr.bf16.mxu0 %v2522_v2 }
 0x324   :  { %v650_v60 = vpop.permute.xlu0 %649 }
 0x325   :  { %2391 = vmatpush3.bf16.msra.mxu0 %v677_v59 }
 0x326   :  { %2403 = vmatprep.subr.bf16.mxu0 %v2522_v2 }
 0x328   :  { %2393 = vmatmul.mubr.msk.bf16.vlgmr.msra.gmra.mrb[8].mxu0 %vm33_vm0, %v650_v60 }
 0x329   :  { %2407 = vmatprep.mubr.msk.bf16.mxu0 %vm2521_vm2, %v2522_v2 }
 0x3f3   :  { %v565_v61 = vpop.f32.mrb[2].mxu0 }
 0x3f4   :  { %v2379_v62 = vpop.f32.mrb[3].mxu0  ;;  %v566_v40 = vadd.f32 %v2219_v37, %v565_v61 }
 0x3f6   :  { %v569_v47 = vmax.f32 %v566_v40, 0.0 }
 0x3fb   :  { %v717_v63 = vpop.f32.mrb[8].mxu0 }
 0x3fc   :  { %v2394_v5 = vpop.f32.mrb[9].mxu0  ;;  %v734_v7 = vrot.slane %v717_v63, 1  ;;  %v750_v8 = vrot.slane %v717_v63, 2  ;;  %v729_v38 = vadd.f32 %v2231_v31, %v717_v63 }
 0x3fd   :  { %v720_v6 = vpop.f32.mrb[10].mxu0 }
 0x3fe   :  { %v735_v9 = vrot.slane %v720_v6, 1  ;;  %v751_v10 = vrot.slane %v720_v6, 2  ;;  %v2395_v11 = vpop.f32.mrb[11].mxu0 }
 0x3ff   :  { %v574_v11 = vpack.c.bf16 %v569_v47, %v569_v47 }
 0x400   :  { %v739_v12 = vsel %vm733_vm8, %v735_v9, %v734_v7  ;;  %v736_v13 = vsel %vm733_vm8, %v734_v7, %v735_v9  ;;  %v755_v14 = vsel %vm749_vm9, %v751_v10, %v750_v8  ;;  %v752_v15 = vsel %vm749_vm9, %v750_v8, %v751_v10 }
 0x401   :  { %743 = vrot.lane.b32.xlu0 %v739_v12, %s2525_s9  ;;  %741 = vrot.lane.b32.xlu1 %v736_v13, %s2525_s9 }
 0x405   :  { %759 = vrot.lane.b32.xlu0 %v755_v14, %s2524_s8  ;;  %757 = vrot.lane.b32.xlu1 %v752_v15, %s2524_s8 }
 0x409   :  { %590 = vrot.lane.b32.xlu1 %v2716_v20, %s2525_s9  ;;  %592 = vrot.lane.b32.xlu0 %v2718_v22, %s2525_s9 }
 0x40d   :  { %982 = vrot.lane.b32.xlu0 %v2238_v25, %s2524_s8  ;;  %980 = vrot.lane.b32.xlu1 %v2237_v26, %s2524_s8 }
 0x411   :  { %986 = vrot.lane.b32.xlu0 %v2240_v29, %s2524_s8  ;;  %984 = vrot.lane.b32.xlu1 %v2239_v30, %s2524_s8 }
 0x415   :  { %960 = vrot.lane.b32.xlu1 %v2562_v1, %s2525_s9  ;;  %962 = vrot.lane.b32.xlu0 %v2574_v3, %s2525_s9  ;;  %v730_v1 = vadd.f32 %v2231_v31, %v720_v6  ;;  %v2190_v31 = vsel %vm205_vm14, 1.0, %v2522_v2 }
 0x419   :  { %896 = vrot.lane.b32.xlu1 %v2716_v20, %s2524_s8  ;;  %898 = vrot.lane.b32.xlu0 %v2718_v22, %s2524_s8 }
 0x473   :  { %v744_v35 = vpop.permute.xlu0 %743  ;;  %v742_v36 = vpop.permute.xlu1 %741 }
 0x474   :  { %v748_v39 = vadd.f32 %v744_v35, %v730_v1  ;;  %v747_v3 = vadd.f32 %v742_v36, %v729_v38 }
 0x477   :  { %v760_v4 = vpop.permute.xlu0 %759  ;;  %v758_v42 = vpop.permute.xlu1 %757 }
 0x478   :  { %v764_v43 = vadd.f32 %v760_v4, %v748_v39  ;;  %v763_v44 = vadd.f32 %v758_v42, %v747_v3 }
 0x47a   :  { %v766_v45 = vmax.f32 %v764_v43, 0.0  ;;  %v765_v46 = vmax.f32 %v763_v44, 0.0 }
 0x47b   :  { %v591_v48 = vpop.permute.xlu1 %590  ;;  %v593_v53 = vpop.permute.xlu0 %592 }
 0x47c   :  { %v770_v49 = vrot.slane %v766_v45, 1  ;;  %v779_v50 = vrot.slane %v766_v45, 2  ;;  %v769_v51 = vrot.slane %v765_v46, 1  ;;  %v778_v52 = vrot.slane %v765_v46, 2  ;;  %2381 = vmatpush3.bf16.msra.mxu1 %v591_v48 }
 0x47d   :  { %2382 = vmatprep.subr.bf16.mxu1 %v2522_v2  ;;  %v788_v54 = vrot.slane %v765_v46, 3  ;;  %v789_v32 = vrot.slane %v766_v45, 3  ;;  %v798_v55 = vrot.slane %v765_v46, 4  ;;  %v799_v56 = vrot.slane %v766_v45, 4 }
 0x47e   :  { %v771_v57 = vsel %vm733_vm8, %v769_v51, %v770_v49  ;;  %v775_v58 = vsel %vm733_vm8, %v770_v49, %v769_v51  ;;  %v780_v59 = vsel %vm749_vm9, %v778_v52, %v779_v50  ;;  %v784_v60 = vsel %vm749_vm9, %v779_v50, %v778_v52 }
 0x47f   :  { %v776_v61 = vmax.f32 %v765_v46, %v771_v57  ;;  %v777_v62 = vmax.f32 %v766_v45, %v775_v58  ;;  %v790_v63 = vsel %vm787_vm10, %v788_v54, %v789_v32  ;;  %v794_v5 = vsel %vm787_vm10, %v789_v32, %v788_v54  ;;  %v981_v10 = vpop.permute.xlu1 %980  ;;  %v983_v18 = vpop.permute.xlu0 %982 }
 0x480   :  { %2383 = vmatpush3.bf16.msra.mxu1 %v593_v53  ;;  %v800_v6 = vsel %vm797_vm11, %v798_v55, %v799_v56  ;;  %v804_v7 = vsel %vm797_vm11, %v799_v56, %v798_v55  ;;  %v808_v8 = vrot.slane %v765_v46, 5  ;;  %v809_v9 = vrot.slane %v766_v45, 5 }
 0x481   :  { %2497 = vmatprep.subr.bf16.mxu1 %v2520_v0  ;;  %v785_v12 = vmax.f32 %v776_v61, %v780_v59  ;;  %v786_v13 = vmax.f32 %v777_v62, %v784_v60  ;;  %v989_v29 = vsel %vm988_vm13, %v981_v10, %v983_v18 }
 0x482   :  { %v810_v14 = vsel %vm807_vm12, %v808_v8, %v809_v9  ;;  %v814_v15 = vsel %vm807_vm12, %v809_v9, %v808_v8  ;;  %v2243_v9 = vld [vmem:[%s3116_s4 + $0x5] ss:$0 sm:$0xff] }
 0x483   :  { %2385 = vmatmul.mubr.msk.bf16.vlgmr.msra.gmra.mrb[8].mxu1 %vm33_vm0, %v574_v11  ;;  %v795_v16 = vmax.f32 %v785_v12, %v790_v63  ;;  %v796_v17 = vmax.f32 %v786_v13, %v794_v5  ;;  %v985_v25 = vpop.permute.xlu1 %984  ;;  %v987_v30 = vpop.permute.xlu0 %986  ;;  %v211_v5 = vshra.s32 %v2617_v33, 4 }
 0x484   :  { %2400 = vmatprep.mubr.msk.f32.mxu1 %vm2521_vm2, %v2522_v2  ;;  %v990_v36 = vsel %vm988_vm13, %v985_v25, %v987_v30 }
 0x485   :  { %v805_v23 = vmax.f32 %v795_v16, %v800_v6  ;;  %v806_v24 = vmax.f32 %v796_v17, %v804_v7  ;;  %vm215_vm15 = vcmp.eq.s32.totalorder %v211_v5, %v2679_v41 }
 0x486   :  { %v2191_v6 = vsel %vm215_vm15, 1.0, %v2522_v2 }
 0x487   :  { %v815_v26 = vmax.f32 %v805_v23, %v810_v14  ;;  %v816_v27 = vmax.f32 %v806_v24, %v814_v15  ;;  %v961_v35 = vpop.permute.xlu1 %960  ;;  %v963_v37 = vpop.permute.xlu0 %962 }
 0x489   :  { %v2498_v28 = vpack.c.bf16 %v816_v27, %v815_v26 }
 0x48b   :  { %2499 = vmatpush3.bf16.msra.mxu1 %v2498_v28  ;;  %v897_v1 = vpop.permute.xlu1 %896  ;;  %v899_v38 = vpop.permute.xlu0 %898 }
 0x48c   :  { %2411 = vmatprep.subr.bf16.mxu1 %v989_v29  ;;  %2404 = vmatpush3.bf16.msra.mxu0 %v897_v1 }
 0x48d   :  { %2405 = vmatprep.subr.bf16.mxu0 %v2522_v2 }
 0x48e   :  { %2401 = vmatmul.mubr.msk.f32.vlgmr.msra.gmra.mrb[2].mxu1 %vm247_vm3, %v2190_v31  ;;  %vm1246_vm3 = vcmask 15360  }
 0x48f   :  { %2412 = vmatpush3.bf16.msra.mxu1 %v989_v29  ;;  %2415 = vmatprep.mubr.msk.bf16.mxu1 %vm33_vm0, %v961_v35 }
 0x490   :  { %2413 = vmatprep.subr.bf16.mxu1 %v990_v36  ;;  %2406 = vmatpush3.bf16.msra.mxu0 %v899_v38 }
 0x493   :  { %2414 = vmatpush3.bf16.msra.mxu1 %v990_v36 }
 0x496   :  { %2416 = vmatmul.mubr.msk.bf16.vlgmr.msra.gmra.mrb[12].mxu1 %vm33_vm0, %v963_v37 }
 0x497   :  { %2429 = vmatprep.mubr.msk.f32.mxu1 %vm1246_vm3, %v2191_v6 }
 0x556   :  { %v2778_v39 = vpop.f32.mrb[8].mxu1 }
 0x557   :  { %v2386_v3 = vpop.f32.mrb[9].mxu1 }
 0x558   :  { %v636_v40 = vpop.f32.mrb[10].mxu1 }
 0x559   :  { %v2387_v4 = vpop.f32.mrb[11].mxu1 }
 0x561   :  { %v886_v42 = vpop.f32.mrb[2].mxu1 }
 0x562   :  { %v890_v43 = vpack.c.bf16 %v886_v42, %v886_v42  ;;  %v2402_v44 = vpop.f32.mrb[3].mxu1 }
 0x564   :  { %2408 = vmatmul.mubr.msk.bf16.vlgmr.msra.gmra.mrb[12].mxu0 %vm33_vm0, %v890_v43 }
 0x569   :  { %v2417_v45 = vpop.f32.mrb[12].mxu1 }
 0x56a   :  { %v1064_v46 = vrot.slane %v2417_v45, 1  ;;  %v1033_v47 = vpop.f32.mrb[13].mxu1  ;;  %v1091_v48 = vrot.slane %v2417_v45, 2  ;;  %v1055_v19 = vadd.f32 %v2417_v45, %v2243_v9 }
 0x56b   :  { %v1061_v49 = vrot.slane %v1033_v47, 1  ;;  %v2418_v50 = vpop.f32.mrb[14].mxu1  ;;  %v1088_v51 = vrot.slane %v1033_v47, 2  ;;  %v1053_v12 = vadd.f32 %v2243_v9, %v1033_v47 }
 0x56c   :  { %v1066_v52 = vrot.slane %v2418_v50, 1  ;;  %v1093_v53 = vrot.slane %v2418_v50, 2  ;;  %v1036_v54 = vpop.f32.mrb[15].mxu1  ;;  %v1056_v18 = vadd.f32 %v2418_v50, %v2243_v9 }
 0x56d   :  { %v1062_v32 = vrot.slane %v1036_v54, 1  ;;  %v1089_v55 = vrot.slane %v1036_v54, 2  ;;  %v1054_v11 = vadd.f32 %v2243_v9, %v1036_v54 }
 0x56e   :  { %v1070_v56 = vsel %vm733_vm8, %v1066_v52, %v1061_v49  ;;  %v1067_v57 = vsel %vm733_vm8, %v1064_v46, %v1066_v52  ;;  %v1097_v58 = vsel %vm749_vm9, %v1093_v53, %v1088_v51  ;;  %v1094_v59 = vsel %vm749_vm9, %v1091_v48, %v1093_v53 }
 0x56f   :  { %1078 = vrot.lane.b32.xlu0 %v1070_v56, %s2525_s9  ;;  %1076 = vrot.lane.b32.xlu1 %v1067_v57, %s2525_s9  ;;  %v1065_v60 = vsel %vm733_vm8, %v1062_v32, %v1064_v46  ;;  %v1063_v61 = vsel %vm733_vm8, %v1061_v49, %v1062_v32  ;;  %v1092_v62 = vsel %vm749_vm9, %v1089_v55, %v1091_v48 }
 0x570   :  { %v1090_v63 = vsel %vm749_vm9, %v1088_v51, %v1089_v55 }
 0x573   :  { %1074 = vrot.lane.b32.xlu0 %v1065_v60, %s2525_s9  ;;  %1072 = vrot.lane.b32.xlu1 %v1063_v61, %s2525_s9 }
 0x577   :  { %1101 = vrot.lane.b32.xlu0 %v1092_v62, %s2524_s8  ;;  %1099 = vrot.lane.b32.xlu1 %v1090_v63, %s2524_s8 }
 0x57b   :  { %1105 = vrot.lane.b32.xlu0 %v1097_v58, %s2524_s8  ;;  %1103 = vrot.lane.b32.xlu1 %v1094_v59, %s2524_s8 }
 0x57f   :  { %1181 = vrot.lane.b32.xlu1 %v2716_v20, %s2526_s10  ;;  %1183 = vrot.lane.b32.xlu0 %v2718_v22, %s2526_s10 }
 0x5e1   :  { %v1079_v7 = vpop.permute.xlu0 %1078  ;;  %v1077_v8 = vpop.permute.xlu1 %1076 }
 0x5e2   :  { %v1087_v25 = vadd.f32 %v1079_v7, %v1056_v18  ;;  %v1086_v26 = vadd.f32 %v1077_v8, %v1055_v19 }
 0x5e5   :  { %v1075_v10 = vpop.permute.xlu0 %1074  ;;  %v1073_v20 = vpop.permute.xlu1 %1072 }
 0x5e6   :  { %v1085_v22 = vadd.f32 %v1075_v10, %v1054_v11  ;;  %v1084_v13 = vadd.f32 %v1073_v20, %v1053_v12 }
 0x5e9   :  { %v1102_v14 = vpop.permute.xlu0 %1101  ;;  %v1100_v15 = vpop.permute.xlu1 %1099 }
 0x5ea   :  { %v1112_v16 = vadd.f32 %v1102_v14, %v1085_v22  ;;  %v1111_v17 = vadd.f32 %v1100_v15, %v1084_v13  ;;  %v2824_v13 = vadd.s32 16, %v2617_v33  ;;  %v212_v14 = vshra.s32 %v2620_v34, 4 }
 0x5eb   :  { %v2828_v15 = vadd.s32 24, %v2617_v33 }
 0x5ec   :  { %v1116_v23 = vmax.f32 %v1112_v16, 0.0  ;;  %v1115_v24 = vmax.f32 %v1111_v17, 0.0  ;;  %v2233_v16 = vld [vmem:[%s3116_s4 + $0x4] ss:$0 sm:$0xff]  ;;  %v213_v17 = vshra.s32 %v2824_v13, 4  ;;  %vm216_vm1 = vcmp.eq.s32.totalorder %v212_v14, %v2679_v41 }
 0x5ed   :  { %v1106_v27 = vpop.permute.xlu0 %1105  ;;  %v1104_v28 = vpop.permute.xlu1 %1103 }
 0x5ee   :  { %v1124_v29 = vrot.slane %v1116_v23, 1  ;;  %v1141_v30 = vrot.slane %v1116_v23, 2  ;;  %v1158_v31 = vrot.slane %v1116_v23, 3  ;;  %v1123_v35 = vrot.slane %v1115_v24, 1 }
 0x5ef   :  { %v1140_v36 = vrot.slane %v1115_v24, 2  ;;  %v1157_v37 = vrot.slane %v1115_v24, 3  ;;  %v1114_v1 = vadd.f32 %v1106_v27, %v1087_v25  ;;  %v1113_v38 = vadd.f32 %v1104_v28, %v1086_v26 }
 0x5f0   :  { %v1125_v3 = vsel %vm733_vm8, %v1123_v35, %v1124_v29  ;;  %vm217_vm5 = vcmp.eq.s32.totalorder %v213_v17, %v2679_v41  ;;  %v2192_v28 = vsel %vm216_vm1, 1.0, %v2522_v2 }
 0x5f1   :  { %v1136_v40 = vmax.f32 %v1115_v24, %v1125_v3  ;;  %v1142_v4 = vsel %vm749_vm9, %v1140_v36, %v1141_v30  ;;  %v1118_v42 = vmax.f32 %v1114_v1, 0.0  ;;  %v1117_v43 = vmax.f32 %v1113_v38, 0.0  ;;  %v1182_v44 = vpop.permute.xlu1 %1181  ;;  %v1184_v45 = vpop.permute.xlu0 %1183  ;;  %v1356_v1 = vld [vmem:[%s3115_s3 + $0x48] sm:$0xff]  ;;  %v1353_v3 = vld [vmem:[%s3115_s3 + $0x10] sm:$0xf] }
 0x5f2   :  { %2419 = vmatprep.subr.bf16.mxu0 %v1182_v44  ;;  %v1159_v46 = vsel %vm787_vm10, %v1157_v37, %v1158_v31  ;;  %v214_v24 = vshra.s32 %v2828_v15, 4  ;;  %v1358_v38 = vld [vmem:[%s3115_s3 + $0x68] sm:$0xff] }
 0x5f3   :  { %v1153_v47 = vmax.f32 %v1136_v40, %v1142_v4  ;;  %v1128_v48 = vrot.slane %v1118_v42, 1  ;;  %v1145_v49 = vrot.slane %v1118_v42, 2  ;;  %v1162_v50 = vrot.slane %v1118_v42, 3  ;;  %2420 = vmatpush3.bf16.msra.mxu0 %v1182_v44  ;;  %v1357_v44 = vld [vmem:[%s3115_s3 + $0x50] sm:$0xf] }
 0x5f4   :  { %v1126_v51 = vrot.slane %v1117_v43, 1  ;;  %v1143_v52 = vrot.slane %v1117_v43, 2  ;;  %v1160_v53 = vrot.slane %v1117_v43, 3  ;;  %2421 = vmatprep.subr.bf16.mxu0 %v1184_v45  ;;  %vm218_vm6 = vcmp.eq.s32.totalorder %v214_v24, %v2679_v41 }
 0x5f5   :  { %v1135_v54 = vsel %vm733_vm8, %v1128_v48, %v1123_v35  ;;  %v1152_v32 = vsel %vm749_vm9, %v1145_v49, %v1140_v36  ;;  %v1169_v55 = vsel %vm787_vm10, %v1162_v50, %v1157_v37  ;;  %v1170_v56 = vmax.f32 %v1153_v47, %v1159_v46  ;;  %v1354_v35 = vld [vmem:[%s3115_s3 + $0x28] sm:$0xff] }
 0x5f6   :  { %v1139_v57 = vmax.f32 %v1118_v42, %v1135_v54  ;;  %v1127_v58 = vsel %vm733_vm8, %v1124_v29, %v1126_v51  ;;  %v1129_v59 = vsel %vm733_vm8, %v1126_v51, %v1128_v48  ;;  %v1146_v60 = vsel %vm749_vm9, %v1143_v52, %v1145_v49  ;;  %v1355_v42 = vld [vmem:[%s3115_s3 + $0x30] sm:$0xf]  ;;  %v2244_v51 = vld [vmem:[%s3116_s4 + $0x6] ss:$0 sm:$0xff] }
 0x5f7   :  { %v1138_v61 = vmax.f32 %v1117_v43, %v1129_v59  ;;  %v1163_v62 = vsel %vm787_vm10, %v1160_v53, %v1162_v50  ;;  %2422 = vmatpush3.bf16.msra.mxu0 %v1184_v45  ;;  %v1137_v63 = vmax.f32 %v1116_v23, %v1127_v58  ;;  %v1144_v5 = vsel %vm749_vm9, %v1141_v30, %v1143_v52  ;;  %v1359_v45 = vld [vmem:[%s3115_s3 + $0x70] sm:$0xf] }
 0x5f8   :  { %v1156_v6 = vmax.f32 %v1139_v57, %v1152_v32  ;;  %v1161_v7 = vsel %vm787_vm10, %v1158_v31, %v1160_v53  ;;  %v2193_v29 = vsel %vm217_vm5, 1.0, %v2522_v2  ;;  %v2194_v30 = vsel %vm218_vm6, 1.0, %v2522_v2  ;;  %v1352_v31 = vld [vmem:[%s3115_s3 + $0x8] sm:$0xff] }
 0x5f9   :  { %v1155_v8 = vmax.f32 %v1138_v61, %v1146_v60  ;;  %v1154_v9 = vmax.f32 %v1137_v63, %v1144_v5  ;;  %v2252_v36 = vcombine.low %v1352_v31, %v1354_v35  ;;  %v2253_v37 = vcombine.high %v1352_v31, %v1354_v35 }
 0x5fa   :  { %v1173_v10 = vmax.f32 %v1156_v6, %v1169_v55  ;;  %v2255_v40 = vcombine.low %v1356_v1, %v1358_v38  ;;  %v2256_v4 = vcombine.high %v1356_v1, %v1358_v38  ;;  %v2254_v43 = vcombine.low %v1353_v3, %v1355_v42 }
 0x5fb   :  { %v1172_v20 = vmax.f32 %v1155_v8, %v1163_v62  ;;  %v1171_v11 = vmax.f32 %v1154_v9, %v1161_v7  ;;  %1400 = vmatprep.subr.bf16.mxu0 %v2253_v37  ;;  %v2257_v46 = vcombine.low %v1357_v44, %v1359_v45 }
 0x5fd   :  { %v1174_v12 = vpack.c.bf16 %v1171_v11, %v1170_v56  ;;  %v1175_v22 = vpack.c.bf16 %v1173_v10, %v1172_v20  ;;  %v2883_v10 = vand.u32 15, %v2617_v33  ;;  %v2890_v20 = vand.u32 15, %v2828_v15 }
 0x5ff   :  { %2423 = vmatprep.mubr.msk.bf16.mxu0 %vm33_vm0, %v1174_v12  ;;  %vm1518_vm7 = vcmp.eq.s32.totalorder %v2883_v10, 1  ;;  %vm1502_vm8 = vcmp.eq.s32.totalorder %v2883_v10, 0  ;;  %vm1626_vm9 = vcmp.eq.s32.totalorder %v2883_v10, 4  ;;  %vm1554_vm10 = vcmp.eq.s32.totalorder %v2883_v10, 2 }
 0x600   :  { %2424 = vmatmul.mubr.msk.bf16.vlgmr.msra.gmra.mrb[16].mxu0 %vm33_vm0, %v1175_v22  ;;  %v2264_v11 = vsel %vm1518_vm7, 1.0, %v2522_v2  ;;  %v2895_v12 = vand.u32 15, %v2620_v34  ;;  %vm1590_vm11 = vcmp.eq.s32.totalorder %v2883_v10, 3  ;;  %v2262_v22 = vsel %vm1502_vm8, 1.0, %v2522_v2 }
 0x601   :  { %1432 = vmatprep.mubr.bf16.mxu0 %v2523_v21  ;;  %1401 = vmatpush1.bf16.msra.mxu0 %v2252_v36  ;;  %v2270_v14 = vsel %vm1626_vm9, 1.0, %v2522_v2  ;;  %v2266_v17 = vsel %vm1554_vm10, 1.0, %v2522_v2  ;;  %vm1757_vm12 = vcmp.eq.s32.totalorder %v2890_v20, 8  ;;  %vm1646_vm9 = vcmp.eq.s32.totalorder %v2883_v10, 5 }
 0x602   :  { %1402 = vmatprep.subr.bf16.mxu0 %v2256_v4  ;;  %vm1755_vm14 = vcmp.eq.s32.totalorder %v2895_v12, 8  ;;  %vm1682_vm10 = vcmp.eq.s32.totalorder %v2883_v10, 6 }
 0x605   :  { %1403 = vmatpush1.bf16.msra.mxu0 %v2255_v40 }
 0x606   :  { %2454 = vmatprep.subr.bf16.mxu0 %v2522_v2 }
 0x637   :  { %v939_v18 = vpop.f32.mrb[12].mxu0 }
 0x638   :  { %v940_v19 = vadd.f32 %v2233_v16, %v939_v18  ;;  %v2409_v23 = vpop.f32.mrb[13].mxu0  ;;  %v2268_v18 = vsel %vm1590_vm11, 1.0, %v2522_v2  ;;  %vm1718_vm11 = vcmp.eq.s32.totalorder %v2883_v10, 7 }
 0x639   :  { %v942_v25 = vpop.f32.mrb[14].mxu0 }
 0x63a   :  { %v945_v26 = vmax.f32 %v940_v19, 0.0  ;;  %v2410_v27 = vpop.f32.mrb[15].mxu0 }
 0x63b   :  { %v2279_v27 = vsel %vm1757_vm12, 1.0, %v2522_v2  ;;  %vm1775_vm12 = vcmp.eq.s32.totalorder %v2895_v12, 9 }
 0x63c   :  { %2427 = vmatprep.subr.msk.mxu1 %vm1259_vm4, %v945_v26 }
 0x63d   :  { %2428 = vmatpush3.msk.msra.mxu1 %vm1259_vm4, %v945_v26 }
 0x63e   :  { %2430 = vmatmul.mubr.msk.f32.vlgmr.msra.gmra.mrb[16].mxu1 %vm1246_vm3, %v2192_v28  ;;  %2435 = vmatprep.subr.bf16.mxu1 %v2254_v43 }
 0x63f   :  { %2432 = vmatprep.mubr.msk.f32.mxu1 %vm1246_vm3, %v2193_v29  ;;  %2436 = vmatpush3.bf16.msra.mxu1 %v2254_v43  ;;  %v2278_v29 = vsel %vm1755_vm14, 1.0, %v2522_v2  ;;  %vm1811_vm14 = vcmp.eq.s32.totalorder %v2895_v12, 10 }
 0x640   :  { %2437 = vmatprep.subr.bf16.mxu1 %v2257_v46 }
 0x642   :  { %2433 = vmatmul.mubr.msk.f32.gmra.mrb[18].mxu1 %vm1246_vm3, %v2194_v30 }
 0x643   :  { %2438 = vmatpush3.bf16.msra.mxu1 %v2257_v46 }
 0x644   :  { %2500 = vmatprep.subr.bf16.mxu1 %v2520_v0 }
 0x6d3   :  { %v2425_v47 = vpop.f32.mrb[16].mxu0 }
 0x6d4   :  { %v1227_v48 = vpop.f32.mrb[17].mxu0  ;;  %v1236_v55 = vadd.f32 %v2425_v47, %v2244_v51  ;;  %v2272_v47 = vsel %vm1646_vm9, 1.0, %v2522_v2 }
 0x6d5   :  { %v2426_v49 = vpop.f32.mrb[18].mxu0  ;;  %v1228_v53 = vadd.f32 %v2244_v51, %v1227_v48 }
 0x6d6   :  { %v1230_v50 = vpop.f32.mrb[19].mxu0  ;;  %v1239_v54 = vadd.f32 %v2426_v49, %v2244_v51  ;;  %v1244_v62 = vmax.f32 %v1236_v55, 0.0 }
 0x6d7   :  { %v1231_v52 = vadd.f32 %v2244_v51, %v1230_v50  ;;  %v1242_v56 = vmax.f32 %v1228_v53, 0.0 }
 0x6d8   :  { %v1245_v61 = vmax.f32 %v1239_v54, 0.0 }
 0x6d9   :  { %v1243_v32 = vmax.f32 %v1231_v52, 0.0 }
 0x711   :  { %v2431_v57 = vpop.f32.mrb[16].mxu1 }
 0x712   :  { %v1349_v58 = vmul.f32 %v2431_v57, %v1243_v32  ;;  %v1329_v59 = vpop.f32.mrb[17].mxu1 }
 0x713   :  { %v1348_v60 = vmul.f32 %v1329_v59, %v1242_v56  ;;  %v2274_v59 = vsel %vm1682_vm10, 1.0, %v2522_v2 }
 0x715   :  { %v1360_v63 = vpack.c.bf16 %v1349_v58, %v1348_v60  ;;  %v2434_v5 = vpop.f32.mrb[18].mxu1 }
 0x716   :  { %v1351_v6 = vmul.f32 %v2434_v5, %v1245_v61  ;;  %v1339_v7 = vpop.f32.mrb[19].mxu1  ;;  %v2280_v5 = vsel %vm1775_vm12, 1.0, %v2522_v2 }
 0x717   :  { %v1350_v8 = vmul.f32 %v1339_v7, %v1244_v62  ;;  %2258 = vmatmul.mubr.msk.bf16.vlgmr.msra.gmra.mrb[20].mxu0 %vm33_vm0, %v1360_v63  ;;  %2439 = vmatprep.mubr.msk.bf16.mxu1 %vm33_vm0, %v1360_v63  ;;  %v2276_v62 = vsel %vm1718_vm11, 1.0, %v2522_v2 }
 0x718   :  { %1442 = vmatprep.mubr.bf16.mxu0 %v2523_v21  ;;  %v231_v21 = vand.u32 15, %v2824_v13 }
 0x719   :  { %v1361_v9 = vpack.c.bf16 %v1351_v6, %v1350_v8  ;;  %v2282_v8 = vsel %vm1811_vm14, 1.0, %v2522_v2 }
 0x71a   :  { %vm1520_vm3 = vcmp.eq.s32.totalorder %v231_v21, 1  ;;  %vm1556_vm15 = vcmp.eq.s32.totalorder %v231_v21, 2  ;;  %vm1592_vm1 = vcmp.eq.s32.totalorder %v231_v21, 3  ;;  %vm1648_vm4 = vcmp.eq.s32.totalorder %v231_v21, 5 }
 0x71b   :  { %2440 = vmatmul.mubr.msk.bf16.vlgmr.msra.gmra.mrb[20].mxu1 %vm33_vm0, %v1361_v9  ;;  %vm1504_vm5 = vcmp.eq.s32.totalorder %v231_v21, 0  ;;  %vm1684_vm6 = vcmp.eq.s32.totalorder %v231_v21, 6  ;;  %vm1720_vm7 = vcmp.eq.s32.totalorder %v231_v21, 7  ;;  %vm1628_vm8 = vcmp.eq.s32.totalorder %v231_v21, 4 }
 0x71c   :  { %2451 = vmatprep.mubr.msk.f32.mxu1 %vm2521_vm2, %v2522_v2  ;;  %v2265_v31 = vsel %vm1520_vm3, 1.0, %v2522_v2  ;;  %v2267_v36 = vsel %vm1556_vm15, 1.0, %v2522_v2  ;;  %v2269_v37 = vsel %vm1592_vm1, 1.0, %v2522_v2  ;;  %v2273_v1 = vsel %vm1648_vm4, 1.0, %v2522_v2 }
 0x71d   :  { %v2263_v38 = vsel %vm1504_vm5, 1.0, %v2522_v2  ;;  %v2275_v4 = vsel %vm1684_vm6, 1.0, %v2522_v2  ;;  %v2277_v42 = vsel %vm1720_vm7, 1.0, %v2522_v2  ;;  %v2271_v43 = vsel %vm1628_vm8, 1.0, %v2522_v2 }
 0x71e   :  { %vm1777_vm3 = vcmp.eq.s32.totalorder %v2890_v20, 9  ;;  %vm1813_vm15 = vcmp.eq.s32.totalorder %v2890_v20, 10  ;;  %v1928_v20 = vld [vmem:[%s3115_s3 + $0x7c] sm:$0xf] }
 0x71f   :  { %2259 = vmatmul.mubr.msk.bf16.gmra.mrb[24].mxu0 %vm33_vm0, %v1361_v9 }
 0x720   :  { %2458 = vmatprep.mubr.msk.bf16.mxu0 %vm2521_vm2, %v2522_v2 }
 0x7ea   :  { %v1434_v16 = vpop.f32.mrb[20].mxu0 }
 0x7eb   :  { %v2901_v13 = vpop.f32.mrb[21].mxu0  ;;  %v1530_v15 = vmul.f32 %v2264_v11, %v1434_v16  ;;  %v2905_v19 = vmul.f32 %v2262_v22, %v1434_v16  ;;  %v1566_v30 = vmul.f32 %v2266_v17, %v1434_v16  ;;  %v1602_v46 = vmul.f32 %v2268_v18, %v1434_v16  ;;  %v1927_v16 = vld [vmem:[%s3115_s3 + $0x5c] sm:$0xf] }
 0x7ec   :  { %v1438_v34 = vpop.f32.mrb[22].mxu0  ;;  %v2909_v23 = vmul.f32 %v2270_v14, %v2901_v13  ;;  %v1658_v58 = vmul.f32 %v2272_v47, %v2901_v13  ;;  %v1694_v61 = vmul.f32 %v2274_v59, %v2901_v13  ;;  %v1730_v63 = vmul.f32 %v2276_v62, %v2901_v13  ;;  %v1926_v18 = vld [vmem:[%s3115_s3 + $0x3c] sm:$0xf] }
 0x7ed   :  { %v2911_v24 = vmul.f32 0.0, %v1438_v34  ;;  %1538 = vrot.lane.b32.xlu1 %v1530_v15, %s2525_s9  ;;  %v1440_v25 = vpop.f32.mrb[23].mxu0  ;;  %v2281_v11 = vsel %vm1777_vm3, 1.0, %v2522_v2  ;;  %v2283_v14 = vsel %vm1813_vm15, 1.0, %v2522_v2  ;;  %v2288_v13 = vcombine.low %v1927_v16, %v1928_v20  ;;  %v1925_v15 = vld [vmem:[%s3115_s3 + $0x1c] sm:$0xf] }
 0x7ee   :  { %v2914_v26 = vpop.f32.mrb[20].mxu1  ;;  %v2962_v60 = vmul.f32 0.0, %v1440_v25  ;;  %v2287_v34 = vcombine.low %v1925_v15, %v1926_v18  ;;  %v2221_v25 = vld [vmem:[%s3116_s4 + $0x2] ss:$0 sm:$0xff] }
 0x7ef   :  { %v1487_v28 = vpop.f32.mrb[21].mxu1  ;;  %1540 = vrot.lane.b32.xlu0 %v2911_v24, %s2525_s9  ;;  %v3012_v12 = vmul.f32 0.0, %v2914_v26  ;;  %v3047_v26 = vadd.f32 %v2221_v25, %v2778_v39 }
 0x7f0   :  { %v2925_v35 = vpop.f32.mrb[22].mxu1  ;;  %v2977_v6 = vmul.f32 0.0, %v1487_v28  ;;  %2455 = vmatpush3.bf16.msra.mxu0 %v2287_v34 }
 0x7f1   :  { %v2936_v3 = vmul.f32 %v2925_v35, %v2279_v27  ;;  %v1490_v40 = vpop.f32.mrb[23].mxu1  ;;  %1574 = vrot.lane.b32.xlu1 %v1566_v30, %s2524_s8  ;;  %v1789_v22 = vmul.f32 %v2925_v35, %v2281_v11  ;;  %v1825_v17 = vmul.f32 %v2925_v35, %v2283_v14  ;;  %2456 = vmatprep.subr.bf16.mxu0 %v2522_v2  ;;  %v639_v27 = vmax.f32 %v3047_v26, 0.0  ;;  %v2290_v26 = vld [vmem:[%s3116_s4 + $0x9] ss:$0 sm:$0xff] }
 0x7f2   :  { %v2945_v44 = vmul.f32 %v2278_v29, %v1490_v40  ;;  %v1444_v45 = vpop.f32.mrb[24].mxu0  ;;  %v1787_v7 = vmul.f32 %v2280_v5, %v1490_v40  ;;  %v1823_v9 = vmul.f32 %v2282_v8, %v1490_v40 }
 0x7f3   :  { %1576 = vrot.lane.b32.xlu0 %v2911_v24, %s2524_s8  ;;  %v1446_v48 = vpop.f32.mrb[25].mxu0  ;;  %v1532_v49 = vmul.f32 %v2265_v31, %v1444_v45  ;;  %v1568_v50 = vmul.f32 %v2267_v36, %v1444_v45  ;;  %v1604_v51 = vmul.f32 %v2269_v37, %v1444_v45  ;;  %v2952_v52 = vmul.f32 %v2263_v38, %v1444_v45 }
 0x7f4   :  { %v1448_v53 = vpop.f32.mrb[26].mxu0  ;;  %v1660_v54 = vmul.f32 %v2273_v1, %v1446_v48  ;;  %v1696_v32 = vmul.f32 %v2275_v4, %v1446_v48  ;;  %v1732_v55 = vmul.f32 %v2277_v42, %v1446_v48  ;;  %v2954_v56 = vmul.f32 %v2271_v43, %v1446_v48  ;;  %2457 = vmatpush3.bf16.msra.mxu0 %v2288_v13 }
 0x7f5   :  { %1610 = vrot.lane.b32.xlu1 %v1602_v46, %s2526_s10  ;;  %v1450_v57 = vpop.f32.mrb[27].mxu0  ;;  %v2989_v10 = vmul.f32 0.0, %v1448_v53  ;;  %2470 = vmatprep.subr.bf16.mxu0 %v2522_v2 }
 0x7f6   :  { %v3000_v21 = vmul.f32 0.0, %v1450_v57 }
 0x7f7   :  { %1612 = vrot.lane.b32.xlu0 %v2911_v24, %s2526_s10 }
 0x7f9   :  { %1666 = vrot.lane.b32.xlu1 %v1658_v58, %s2525_s9 }
 0x7fb   :  { %1668 = vrot.lane.b32.xlu0 %v2962_v60, %s2525_s9 }
 0x7fd   :  { %1702 = vrot.lane.b32.xlu1 %v1694_v61, %s2524_s8 }
 0x7ff   :  { %1704 = vrot.lane.b32.xlu0 %v2962_v60, %s2524_s8 }
 0x801   :  { %1738 = vrot.lane.b32.xlu1 %v1730_v63, %s2526_s10 }
 0x803   :  { %1740 = vrot.lane.b32.xlu0 %v2962_v60, %s2526_s10 }
 0x805   :  { %1794 = vrot.lane.b32.xlu1 %v2977_v6, %s2525_s9 }
 0x807   :  { %1796 = vrot.lane.b32.xlu0 %v1787_v7, %s2525_s9 }
 0x809   :  { %1830 = vrot.lane.b32.xlu1 %v2977_v6, %s2524_s8 }
 0x80b   :  { %1832 = vrot.lane.b32.xlu0 %v1823_v9, %s2524_s8 }
 0x80d   :  { %1542 = vrot.lane.b32.xlu1 %v1532_v49, %s2525_s9 }
 0x80f   :  { %1544 = vrot.lane.b32.xlu0 %v2989_v10, %s2525_s9 }
 0x811   :  { %1578 = vrot.lane.b32.xlu1 %v1568_v50, %s2524_s8 }
 0x813   :  { %1580 = vrot.lane.b32.xlu0 %v2989_v10, %s2524_s8 }
 0x815   :  { %1614 = vrot.lane.b32.xlu1 %v1604_v51, %s2526_s10 }
 0x817   :  { %1616 = vrot.lane.b32.xlu0 %v2989_v10, %s2526_s10 }
 0x819   :  { %1670 = vrot.lane.b32.xlu1 %v1660_v54, %s2525_s9 }
 0x81b   :  { %1672 = vrot.lane.b32.xlu0 %v3000_v21, %s2525_s9 }
 0x81d   :  { %1706 = vrot.lane.b32.xlu1 %v1696_v32, %s2524_s8 }
 0x81f   :  { %1708 = vrot.lane.b32.xlu0 %v3000_v21, %s2524_s8 }
 0x821   :  { %1742 = vrot.lane.b32.xlu1 %v1732_v55, %s2526_s10 }
 0x823   :  { %1744 = vrot.lane.b32.xlu0 %v3000_v21, %s2526_s10 }
 0x825   :  { %1798 = vrot.lane.b32.xlu1 %v3012_v12, %s2525_s9 }
 0x827   :  { %1800 = vrot.lane.b32.xlu0 %v1789_v22, %s2525_s9 }
 0x829   :  { %1834 = vrot.lane.b32.xlu1 %v3012_v12, %s2524_s8 }
 0x82b   :  { %1836 = vrot.lane.b32.xlu0 %v1825_v17, %s2524_s8 }
 0x82d   :  { %1998 = vrot.lane.b32.xlu1 %v2287_v34, %s2525_s9 }
 0x82f   :  { %2000 = vrot.lane.b32.xlu0 %v2288_v13, %s2525_s9 }
 0x831   :  { %2054 = vrot.lane.b32.xlu1 %v2287_v34, %s2524_s8 }
 0x833   :  { %2056 = vrot.lane.b32.xlu0 %v2288_v13, %s2524_s8 }
 0x835   :  { %2110 = vrot.lane.b32.xlu1 %v2287_v34, %s2526_s10 }
 0x837   :  { %2112 = vrot.lane.b32.xlu0 %v2288_v13, %s2526_s10 }
 0x83b   :  { %2165 = vrot.lane.b32.xlu0 %v639_v27, %s2524_s8 }
 0x85f   :  { %v1539_v28 = vpop.permute.xlu1 %1538 }
 0x860   :  { %v1550_v31 = vadd.f32 %v1539_v28, %v2905_v19 }
 0x861   :  { %v1541_v29 = vpop.permute.xlu0 %1540 }
 0x862   :  { %v1551_v39 = vadd.f32 %v1541_v29, %v2911_v24 }
 0x863   :  { %v1575_v30 = vpop.permute.xlu1 %1574 }
 0x864   :  { %v1586_v36 = vadd.f32 %v1575_v30, %v1550_v31 }
 0x865   :  { %v1577_v35 = vpop.permute.xlu0 %1576 }
 0x866   :  { %v1587_v1 = vadd.f32 %v1577_v35, %v1551_v39 }
 0x867   :  { %v1611_v37 = vpop.permute.xlu1 %1610 }
 0x868   :  { %v1622_v38 = vadd.f32 %v1611_v37, %v1586_v36 }
 0x869   :  { %v1613_v40 = vpop.permute.xlu0 %1612 }
 0x86a   :  { %v1623_v4 = vadd.f32 %v1613_v40, %v1587_v1  ;;  %v1642_v42 = vadd.f32 %v2909_v23, %v1622_v38 }
 0x86b   :  { %v1667_v43 = vpop.permute.xlu1 %1666 }
 0x86c   :  { %v1643_v46 = vadd.f32 %v2962_v60, %v1623_v4  ;;  %v1678_v48 = vadd.f32 %v1667_v43, %v1642_v42  ;;  %v200_v42 = vshra.s32 %v2679_v41, 4  ;;  %v2284_v41 = vld [vmem:[%s3116_s4 + $0x7] ss:$0 sm:$0xff] }
 0x86d   :  { %v1669_v45 = vpop.permute.xlu0 %1668 }
 0x86e   :  { %v1679_v50 = vadd.f32 %v1669_v45, %v1643_v46  ;;  %vm201_vm1 = vcmp.eq.s32.totalorder %v200_v42, %v2617_v33 }
 0x86f   :  { %v1703_v47 = vpop.permute.xlu1 %1702 }
 0x870   :  { %v1714_v19 = vadd.f32 %v1703_v47, %v1678_v48 }
 0x871   :  { %v1705_v49 = vpop.permute.xlu0 %1704 }
 0x872   :  { %v1715_v53 = vadd.f32 %v1705_v49, %v1679_v50  ;;  %v2189_v49 = vsel %vm201_vm1, 1.0, %v2522_v2 }
 0x873   :  { %v1739_v51 = vpop.permute.xlu1 %1738 }
 0x874   :  { %v1750_v24 = vadd.f32 %v1739_v51, %v1714_v19 }
 0x875   :  { %v1741_v54 = vpop.permute.xlu0 %1740 }
 0x876   :  { %v1751_v32 = vadd.f32 %v1741_v54, %v1715_v53  ;;  %v1770_v57 = vadd.f32 %v2977_v6, %v1750_v24 }
 0x877   :  { %v1795_v55 = vpop.permute.xlu1 %1794 }
 0x878   :  { %v1771_v58 = vadd.f32 %v2945_v44, %v1751_v32  ;;  %v1806_v61 = vadd.f32 %v1795_v55, %v1770_v57  ;;  %v2286_v32 = vld [vmem:[%s3116_s4 + $0x8] ss:$0 sm:$0xff] }
 0x879   :  { %v1797_v23 = vpop.permute.xlu0 %1796 }
 0x87a   :  { %v1807_v62 = vadd.f32 %v1797_v23, %v1771_v58 }
 0x87b   :  { %v1831_v59 = vpop.permute.xlu1 %1830 }
 0x87c   :  { %v1842_v63 = vadd.f32 %v1831_v59, %v1806_v61 }
 0x87d   :  { %v1833_v60 = vpop.permute.xlu0 %1832 }
 0x87e   :  { %v1843_v5 = vadd.f32 %v1833_v60, %v1807_v62 }
 0x87f   :  { %v1543_v7 = vpop.permute.xlu1 %1542 }
 0x880   :  { %v2501_v8 = vpack.c.bf16 %v1843_v5, %v1842_v63  ;;  %v1552_v22 = vadd.f32 %v1543_v7, %v2952_v52 }
 0x881   :  { %v1545_v9 = vpop.permute.xlu0 %1544 }
 0x882   :  { %2502 = vmatpush3.bf16.msra.mxu1 %v2501_v8  ;;  %v1553_v6 = vadd.f32 %v1545_v9, %v2989_v10 }
 0x883   :  { %v1579_v11 = vpop.permute.xlu1 %1578  ;;  %2503 = vmatprep.subr.bf16.mxu1 %v2520_v0 }
 0x884   :  { %v1588_v44 = vadd.f32 %v1579_v11, %v1552_v22 }
 0x885   :  { %v1581_v14 = vpop.permute.xlu0 %1580 }
 0x886   :  { %v1589_v20 = vadd.f32 %v1581_v14, %v1553_v6  ;;  %v2292_v6 = vld [vmem:[%s3116_s4 + $0xa] ss:$0 sm:$0xff] }
 0x887   :  { %v1615_v16 = vpop.permute.xlu1 %1614 }
 0x888   :  { %v1624_v17 = vadd.f32 %v1615_v16, %v1588_v44 }
 0x889   :  { %v1617_v13 = vpop.permute.xlu0 %1616 }
 0x88a   :  { %v1625_v15 = vadd.f32 %v1617_v13, %v1589_v20  ;;  %v1644_v18 = vadd.f32 %v2954_v56, %v1624_v17 }
 0x88b   :  { %v1671_v34 = vpop.permute.xlu1 %1670 }
 0x88c   :  { %v1645_v28 = vadd.f32 %v3000_v21, %v1625_v15  ;;  %v1680_v30 = vadd.f32 %v1671_v34, %v1644_v18  ;;  %v2294_v18 = vld [vmem:[%s3116_s4 + $0xb] ss:$0 sm:$0xff] }
 0x88d   :  { %v1673_v25 = vpop.permute.xlu0 %1672 }
 0x88e   :  { %v1681_v31 = vadd.f32 %v1673_v25, %v1645_v28 }
 0x88f   :  { %v1707_v29 = vpop.permute.xlu1 %1706 }
 0x890   :  { %v1716_v52 = vadd.f32 %v1707_v29, %v1680_v30 }
 0x891   :  { %v1709_v0 = vpop.permute.xlu0 %1708 }
 0x892   :  { %v1717_v39 = vadd.f32 %v1709_v0, %v1681_v31 }
 0x893   :  { %v1743_v35 = vpop.permute.xlu1 %1742 }
 0x894   :  { %v1752_v10 = vadd.f32 %v1743_v35, %v1716_v52 }
 0x895   :  { %v1745_v36 = vpop.permute.xlu0 %1744 }
 0x896   :  { %v1753_v37 = vadd.f32 %v1745_v36, %v1717_v39  ;;  %v1772_v38 = vadd.f32 %v3012_v12, %v1752_v10 }
 0x897   :  { %v1799_v1 = vpop.permute.xlu1 %1798 }
 0x898   :  { %v1773_v40 = vadd.f32 %v2936_v3, %v1753_v37  ;;  %v1808_v21 = vadd.f32 %v1799_v1, %v1772_v38 }
 0x899   :  { %v1801_v56 = vpop.permute.xlu0 %1800 }
 0x89a   :  { %v1809_v43 = vadd.f32 %v1801_v56, %v1773_v40 }
 0x89b   :  { %v1835_v4 = vpop.permute.xlu1 %1834 }
 0x89c   :  { %v1844_v46 = vadd.f32 %v1835_v4, %v1808_v21 }
 0x89d   :  { %v1837_v45 = vpop.permute.xlu0 %1836 }
 0x89e   :  { %v1845_v47 = vadd.f32 %v1837_v45, %v1809_v43 }
 0x89f   :  { %v1999_v51 = vpop.permute.xlu1 %1998 }
 0x8a0   :  { %v2504_v48 = vpack.c.bf16 %v1845_v47, %v1844_v46 }
 0x8a1   :  { %v2001_v53 = vpop.permute.xlu0 %2000 }
 0x8a2   :  { %2505 = vmatpush3.bf16.msra.mxu1 %v2504_v48 }
 0x8a3   :  { %2462 = vmatprep.subr.bf16.mxu1 %v2522_v2  ;;  %v2055_v24 = vpop.permute.xlu1 %2054 }
 0x8a5   :  { %2452 = vmatmul.mubr.msk.f32.vlgmr.msra.gmra.mrb[24].mxu1 %vm33_vm0, %v2189_v49  ;;  %v2057_v54 = vpop.permute.xlu0 %2056 }
 0x8a6   :  { %2466 = vmatprep.mubr.msk.bf16.mxu1 %vm2521_vm2, %v2522_v2  ;;  %2463 = vmatpush3.bf16.msra.mxu1 %v1999_v51 }
 0x8a7   :  { %2464 = vmatprep.subr.bf16.mxu1 %v2522_v2  ;;  %v2111_v63 = vpop.permute.xlu1 %2110 }
 0x8a9   :  { %v2113_v5 = vpop.permute.xlu0 %2112 }
 0x8aa   :  { %2465 = vmatpush3.bf16.msra.mxu1 %v2001_v53 }
 0x8ab   :  { %2478 = vmatprep.subr.bf16.mxu1 %v2522_v2 }
 0x8ad   :  { %v2166_v52 = vpop.permute.xlu0 %2165 }
 0x978   :  { %v1920_v3 = vpop.f32.mrb[24].mxu1 }
 0x979   :  { %v1921_v12 = vadd.f32 %v2284_v41, %v1920_v3  ;;  %v2453_v50 = vpop.f32.mrb[25].mxu1 }
 0x97b   :  { %v1924_v19 = vmax.f32 %v1921_v12, 0.0 }
 0x97d   :  { %v1929_v33 = vpack.c.bf16 %v1924_v19, %v1924_v19 }
 0x97f   :  { %2459 = vmatmul.mubr.msk.bf16.vlgmr.msra.gmra.mrb[28].mxu0 %vm33_vm0, %v1929_v33 }
 0x980   :  { %2474 = vmatprep.mubr.msk.bf16.mxu0 %vm2521_vm2, %v2522_v2  ;;  %2471 = vmatpush3.bf16.msra.mxu0 %v2055_v24 }
 0x981   :  { %2472 = vmatprep.subr.bf16.mxu0 %v2522_v2 }
 0x984   :  { %2473 = vmatpush3.bf16.msra.mxu0 %v2057_v54 }
 0xa52   :  { %v1984_v55 = vpop.f32.mrb[28].mxu0 }
 0xa53   :  { %v1985_v57 = vadd.f32 %v2286_v32, %v1984_v55  ;;  %v2460_v58 = vpop.f32.mrb[29].mxu0 }
 0xa54   :  { %v1987_v23 = vpop.f32.mrb[30].mxu0 }
 0xa55   :  { %v1990_v59 = vmax.f32 %v1985_v57, 0.0  ;;  %v2461_v61 = vpop.f32.mrb[31].mxu0 }
 0xa57   :  { %v1991_v62 = vadd.f32 %v1990_v59, %v639_v27 }
 0xa59   :  { %v1992_v60 = vpack.c.bf16 %v1991_v62, %v1991_v62  ;;  %2161 = vrot.lane.b32.xlu1 %v1991_v62, %s2526_s10 }
 0xa5b   :  { %2467 = vmatmul.mubr.msk.bf16.vlgmr.msra.gmra.mrb[28].mxu1 %vm33_vm0, %v1992_v60 }
 0xa5c   :  { %2479 = vmatpush3.bf16.msra.mxu1 %v2111_v63  ;;  %2482 = vmatprep.mubr.msk.bf16.mxu1 %vm2521_vm2, %v2522_v2  ;;  %vm2175_vm2 = vcmask 785408  }
 0xa5d   :  { %2169 = vrot.lane.b32.xlu1 %v1990_v59, %s2525_s9  ;;  %2480 = vmatprep.subr.bf16.mxu1 %v2522_v2 }
 0xa60   :  { %2481 = vmatpush3.bf16.msra.mxu1 %v2113_v5 }
 0xacb   :  { %v2162_v34 = vpop.permute.xlu1 %2161 }
 0xacf   :  { %v2170_v39 = vpop.permute.xlu1 %2169 }
 0xb2e   :  { %v2041_v27 = vpop.f32.mrb[28].mxu1 }
 0xb2f   :  { %v2042_v7 = vadd.f32 %v2290_v26, %v2041_v27  ;;  %v2468_v8 = vpop.f32.mrb[29].mxu1 }
 0xb30   :  { %v2044_v9 = vpop.f32.mrb[30].mxu1 }
 0xb31   :  { %v2047_v11 = vmax.f32 %v2042_v7, 0.0  ;;  %v2469_v22 = vpop.f32.mrb[31].mxu1 }
 0xb33   :  { %v2048_v14 = vpack.c.bf16 %v2047_v11, %v2047_v11 }
 0xb35   :  { %2475 = vmatmul.mubr.msk.bf16.vlgmr.msra.gmra.mrb[32].mxu0 %vm33_vm0, %v2048_v14 }
 0xc08   :  { %v2097_v2 = vpop.f32.mrb[32].mxu0 }
 0xc09   :  { %v2098_v44 = vadd.f32 %v2292_v6, %v2097_v2  ;;  %v2476_v16 = vpop.f32.mrb[33].mxu0 }
 0xc0a   :  { %v2100_v20 = vpop.f32.mrb[34].mxu0 }
 0xc0b   :  { %v2103_v17 = vmax.f32 %v2098_v44, 0.0  ;;  %v2477_v13 = vpop.f32.mrb[35].mxu0 }
 0xc0d   :  { %v2104_v15 = vpack.c.bf16 %v2103_v17, %v2103_v17 }
 0xc0f   :  { %2483 = vmatmul.mubr.msk.bf16.vlgmr.msra.gmra.mrb[32].mxu1 %vm33_vm0, %v2104_v15 }
 0xce2   :  { %v2153_v25 = vpop.f32.mrb[32].mxu1 }
 0xce3   :  { %v2154_v28 = vadd.f32 %v2294_v18, %v2153_v25  ;;  %v2484_v29 = vpop.f32.mrb[33].mxu1 }
 0xce4   :  { %v2156_v30 = vpop.f32.mrb[34].mxu1 }
 0xce5   :  { %v2159_v0 = vmax.f32 %v2154_v28, 0.0  ;;  %v2485_v31 = vpop.f32.mrb[35].mxu1 }
 0xce7   :  { %v2172_v35 = vsel %vm33_vm0, %v2159_v0, %v2162_v34 }
 0xce8   :  { %v2174_v10 = vsel %vm988_vm13, %v2172_v35, %v2166_v52 }
 0xce9   :  { %v2176_v36 = vsel %vm2175_vm2, %v2174_v10, %v2170_v39 }
 0xcea   :  { %2177 = vst [vmem:[%s3117_s5] sm:$0x3] %v2176_v36 }

</bundles_post_ra>
